<compile_context>
chip_gen: v6e
topology: v6e:2x2x1
jax: 0.10.0
libtpu: 0.0.40
codegen_flags: <defaults>
</compile_context>

<pallas_src>
import functools
import math

import jax
import jax.numpy as jnp
from jax import lax
from jax.experimental import pallas as pl
from jax.experimental.pallas import tpu as pltpu

VMEM_SPEC = pl.BlockSpec(memory_space=pltpu.MemorySpace.VMEM)


# ------------------------------------------------------------------ kernel ---

def _fused_forward_kernel(*refs, S, B, nhead, d_model, d_hid, nlayers):
    """refs = (x, pe, mask, enc_w, enc_b, <12 per layer>..., fc1_w, fc1_b,
               fc2_w, fc2_b, fc3_w, fc3_b, out_ref)."""
    eps = 1e-5
    dh = d_model // nhead
    scale = 1.0 / math.sqrt(dh)

    (x_ref, pe_ref, mask_ref, enc_w, enc_b), rest = refs[:5], refs[5:]
    layer_refs = [rest[l * 12:(l + 1) * 12] for l in range(nlayers)]
    fc1_w, fc1_b, fc2_w, fc2_b, fc3_w, fc3_b, out_ref = rest[nlayers * 12:]

    def layer_norm(z, g, b):
        mu = jnp.mean(z, axis=-1, keepdims=True)
        var = jnp.mean(jnp.square(z - mu), axis=-1, keepdims=True)
        return (z - mu) * lax.rsqrt(var + eps) * g + b

    # input projection + positional encoding (dropout = identity in eval mode)
    x = jnp.dot(x_ref[...], enc_w[...], preferred_element_type=jnp.float32)
    x = x + enc_b[...] + pe_ref[...]                       # [B*S, D]
    mask = mask_ref[...]                                   # [S, S] additive

    for (w_in, b_in, w_out, b_out, ln1_g, ln1_b,
         w_ff1, b_ff1, w_ff2, b_ff2, ln2_g, ln2_b) in layer_refs:
        # --- self attention (post-norm torch layer, eval mode) -------------
        qkv = jnp.dot(x, w_in[...], preferred_element_type=jnp.float32)
        qkv = qkv + b_in[...]                              # [B*S, 3D]
        w_out_v = w_out[...]                               # [D, D] (pre-transposed)

        per_batch = []
        for b in range(B):
            r0 = b * S
            acc = None
            for h in range(nhead):
                c0 = h * dh
                q = qkv[r0:r0 + S, c0:c0 + dh] * scale                   # [S, dh]
                k = qkv[r0:r0 + S, d_model + c0:d_model + c0 + dh]       # [S, dh]
                v = qkv[r0:r0 + S, 2 * d_model + c0:2 * d_model + c0 + dh]
                s = lax.dot_general(q, k, (((1,), (1,)), ((), ())),
                                    preferred_element_type=jnp.float32)  # q @ k^T
                s = s + mask
                s = s - jnp.max(s, axis=-1, keepdims=True)
                p = jnp.exp(s)
                p = p * pl.reciprocal(jnp.sum(p, axis=-1, keepdims=True),
                                      approx=True)
                o = jnp.dot(p, v, preferred_element_type=jnp.float32)    # [S, dh]
                # head-concat folded into the out-projection:
                contrib = jnp.dot(o, w_out_v[c0:c0 + dh, :],
                                  preferred_element_type=jnp.float32)    # [S, D]
                acc = contrib if acc is None else acc + contrib
            per_batch.append(acc + b_out[...])
        attn = jnp.concatenate(per_batch, axis=0)                        # [B*S, D]
        x = layer_norm(x + attn, ln1_g[...], ln1_b[...])

        # --- feed forward ---------------------------------------------------
        h1 = jnp.dot(x, w_ff1[...], preferred_element_type=jnp.float32)
        h1 = jnp.maximum(h1 + b_ff1[...], 0.0)
        ff = jnp.dot(h1, w_ff2[...], preferred_element_type=jnp.float32)
        ff = ff + b_ff2[...]
        x = layer_norm(x + ff, ln2_g[...], ln2_b[...])

    # --- AvgPool1d(seq_len) over the sequence axis -> [B, D] ---------------
    pooled = jnp.concatenate(
        [jnp.mean(x[b * S:(b + 1) * S, :], axis=0, keepdims=True)
         for b in range(B)], axis=0)

    # --- classifier head ----------------------------------------------------
    z = jnp.dot(pooled, fc1_w[...], preferred_element_type=jnp.float32) + fc1_b[...]
    z = jnp.maximum(z, 0.0)
    z = jnp.dot(z, fc2_w[...], preferred_element_type=jnp.float32) + fc2_b[...]
    z = jnp.maximum(z, 0.0)
    z = jnp.dot(z, fc3_w[...], preferred_element_type=jnp.float32) + fc3_b[...]
    out_ref[...] = jax.nn.sigmoid(z)                                     # [B, 1]


# --------------------------------------------------------------- glue / setup ---

def make_positional_encoding(seq_len, d_model):
    # d_model is even (32) -> standard sin/cos interleave
    position = jnp.arange(seq_len, dtype=jnp.float32)[:, None]
    div_term = jnp.exp(jnp.arange(0, d_model, 2, dtype=jnp.float32)
                       * (-math.log(10000.0) / d_model))
    pe = jnp.zeros((seq_len, d_model), jnp.float32)
    pe = pe.at[:, 0::2].set(jnp.sin(position * div_term))
    pe = pe.at[:, 1::2].set(jnp.cos(position * div_term))
    return pe  # [S, D]


def init_params(key, input_dim, d_model, nhead, d_hid, nlayers):
    """Weights stored pre-transposed ([K, N]) and biases as [1, N]."""
    def u(k, shape, scale=0.1):
        return jax.random.uniform(k, shape, jnp.float32, -scale, scale)

    keys = iter(jax.random.split(key, 8 + 8 * nlayers))
    p = {
        "enc_w": u(next(keys), (input_dim, d_model)),
        "enc_b": u(next(keys), (1, d_model)),
        "fc1_w": u(next(keys), (d_model, 128)),
        "fc1_b": jnp.zeros((1, 128), jnp.float32),
        "fc2_w": u(next(keys), (128, 64)),
        "fc2_b": jnp.zeros((1, 64), jnp.float32),
        "fc3_w": u(next(keys), (64, 1)),
        "fc3_b": jnp.zeros((1, 1), jnp.float32),
        "layers": [],
    }
    for _ in range(nlayers):
        p["layers"].append({
            "w_in": u(next(keys), (d_model, 3 * d_model)),   # in_proj_weight.T
            "b_in": u(next(keys), (1, 3 * d_model)),
            "w_out": u(next(keys), (d_model, d_model)),      # out_proj.weight.T
            "b_out": u(next(keys), (1, d_model)),
            "ln1_g": jnp.ones((1, d_model), jnp.float32),
            "ln1_b": jnp.zeros((1, d_model), jnp.float32),
            "w_ff1": u(next(keys), (d_model, d_hid)),        # linear1.weight.T
            "b_ff1": u(next(keys), (1, d_hid)),
            "w_ff2": u(next(keys), (d_hid, d_model)),        # linear2.weight.T
            "b_ff2": u(next(keys), (1, d_model)),
            "ln2_g": jnp.ones((1, d_model), jnp.float32),
            "ln2_b": jnp.zeros((1, d_model), jnp.float32),
        })
    return p


def transformer_forward(params, src, src_mask, *, nhead):
    """src: [S, B, input_dim]; src_mask: [S, S] additive float mask.
    Returns [B, 1, 1] (torch's .squeeze(0) is a no-op for B > 1)."""
    S, B, input_dim = src.shape
    d_model = params["enc_w"].shape[1]
    d_hid = params["layers"][0]["w_ff1"].shape[1]
    nlayers = len(params["layers"])

    # layout plumbing only (constant-folded / tiny): batch-major flatten + PE tile
    x_bm = src.transpose(1, 0, 2).reshape(B * S, input_dim)       # row = b*S + s
    pe_bm = jnp.tile(make_positional_encoding(S, d_model), (B, 1))

    inputs = [x_bm, pe_bm, src_mask, params["enc_w"], params["enc_b"]]
    for lp in params["layers"]:
        inputs += [lp["w_in"], lp["b_in"], lp["w_out"], lp["b_out"],
                   lp["ln1_g"], lp["ln1_b"],
                   lp["w_ff1"], lp["b_ff1"], lp["w_ff2"], lp["b_ff2"],
                   lp["ln2_g"], lp["ln2_b"]]
    inputs += [params["fc1_w"], params["fc1_b"],
               params["fc2_w"], params["fc2_b"],
               params["fc3_w"], params["fc3_b"]]

    kernel = functools.partial(_fused_forward_kernel, S=S, B=B, nhead=nhead,
                               d_model=d_model, d_hid=d_hid, nlayers=nlayers)
    out = pl.pallas_call(
        kernel,
        out_shape=jax.ShapeDtypeStruct((B, 1), jnp.float32),
        in_specs=[VMEM_SPEC] * len(inputs),
        out_specs=VMEM_SPEC,
    )(*inputs)
    return out.reshape(B, 1, 1)


# ----------------------------------------------------------------------- main ---

if __name__ == "__main__":
    key = jax.random.PRNGKey(0)
    k_params, k_src = jax.random.split(key)

    S, B, input_dim = 8, 2, 3
    d_model, nhead, d_hid, nlayers = 32, 4, 64, 2

    params = init_params(k_params, input_dim, d_model, nhead, d_hid, nlayers)
    src = jax.random.normal(k_src, (S, B, input_dim), jnp.float32)
    src_mask = jnp.zeros((S, S), jnp.float32)  # additive attention mask

    fwd = jax.jit(functools.partial(transformer_forward, nhead=nhead))
    out = fwd(params, src, src_mask)
    jax.block_until_ready(out)
    assert out.shape == (B, 1, 1), out.shape
    print("KERNEL_OK")
</pallas_src>

<mosaic_0001>
module attributes {stable_mosaic.version = 11 : i64} {
  func.func @_fused_forward_kernel(%arg0: memref<16x3xf32, #tpu.memory_space<vmem>>, %arg1: memref<16x32xf32, #tpu.memory_space<vmem>>, %arg2: memref<8x8xf32, #tpu.memory_space<vmem>>, %arg3: memref<3x32xf32, #tpu.memory_space<vmem>>, %arg4: memref<1x32xf32, #tpu.memory_space<vmem>>, %arg5: memref<32x96xf32, #tpu.memory_space<vmem>>, %arg6: memref<1x96xf32, #tpu.memory_space<vmem>>, %arg7: memref<32x32xf32, #tpu.memory_space<vmem>>, %arg8: memref<1x32xf32, #tpu.memory_space<vmem>>, %arg9: memref<1x32xf32, #tpu.memory_space<vmem>>, %arg10: memref<1x32xf32, #tpu.memory_space<vmem>>, %arg11: memref<32x64xf32, #tpu.memory_space<vmem>>, %arg12: memref<1x64xf32, #tpu.memory_space<vmem>>, %arg13: memref<64x32xf32, #tpu.memory_space<vmem>>, %arg14: memref<1x32xf32, #tpu.memory_space<vmem>>, %arg15: memref<1x32xf32, #tpu.memory_space<vmem>>, %arg16: memref<1x32xf32, #tpu.memory_space<vmem>>, %arg17: memref<32x96xf32, #tpu.memory_space<vmem>>, %arg18: memref<1x96xf32, #tpu.memory_space<vmem>>, %arg19: memref<32x32xf32, #tpu.memory_space<vmem>>, %arg20: memref<1x32xf32, #tpu.memory_space<vmem>>, %arg21: memref<1x32xf32, #tpu.memory_space<vmem>>, %arg22: memref<1x32xf32, #tpu.memory_space<vmem>>, %arg23: memref<32x64xf32, #tpu.memory_space<vmem>>, %arg24: memref<1x64xf32, #tpu.memory_space<vmem>>, %arg25: memref<64x32xf32, #tpu.memory_space<vmem>>, %arg26: memref<1x32xf32, #tpu.memory_space<vmem>>, %arg27: memref<1x32xf32, #tpu.memory_space<vmem>>, %arg28: memref<1x32xf32, #tpu.memory_space<vmem>>, %arg29: memref<32x128xf32, #tpu.memory_space<vmem>>, %arg30: memref<1x128xf32, #tpu.memory_space<vmem>>, %arg31: memref<128x64xf32, #tpu.memory_space<vmem>>, %arg32: memref<1x64xf32, #tpu.memory_space<vmem>>, %arg33: memref<64x1xf32, #tpu.memory_space<vmem>>, %arg34: memref<1x1xf32, #tpu.memory_space<vmem>>, %arg35: memref<2x1xf32, #tpu.memory_space<vmem>>) attributes {dimension_semantics = [], scalar_prefetch = 0 : i64, scratch_operands = 0 : i64, tpu.core_type = #tpu.core_type<tc>} {
    %c0 = arith.constant 0 : index
    %c0_0 = arith.constant 0 : index
    %0 = vector.load %arg0[%c0, %c0_0] : memref<16x3xf32, #tpu.memory_space<vmem>>, vector<16x3xf32>
    %c0_1 = arith.constant 0 : index
    %c0_2 = arith.constant 0 : index
    %1 = vector.load %arg3[%c0_1, %c0_2] : memref<3x32xf32, #tpu.memory_space<vmem>>, vector<3x32xf32>
    %cst = arith.constant dense<0.000000e+00> : vector<16x32xf32>
    %2 = tpu.matmul %0, %1, %cst {dimension_numbers = #tpu.dot_dimension_numbers<[1], [0], [0], [1], [0, 0, 1, 1], [], []>} : vector<16x3xf32>, vector<3x32xf32>, vector<16x32xf32> -> vector<16x32xf32>
    %c0_3 = arith.constant 0 : index
    %c0_4 = arith.constant 0 : index
    %3 = vector.load %arg4[%c0_3, %c0_4] : memref<1x32xf32, #tpu.memory_space<vmem>>, vector<1x32xf32>
    %4 = vector.broadcast %3 : vector<1x32xf32> to vector<16x32xf32>
    %5 = arith.addf %2, %4 : vector<16x32xf32>
    %c0_5 = arith.constant 0 : index
    %c0_6 = arith.constant 0 : index
    %6 = vector.load %arg1[%c0_5, %c0_6] : memref<16x32xf32, #tpu.memory_space<vmem>>, vector<16x32xf32>
    %7 = arith.addf %5, %6 : vector<16x32xf32>
    %c0_7 = arith.constant 0 : index
    %c0_8 = arith.constant 0 : index
    %8 = vector.load %arg2[%c0_7, %c0_8] : memref<8x8xf32, #tpu.memory_space<vmem>>, vector<8x8xf32>
    %c0_9 = arith.constant 0 : index
    %c0_10 = arith.constant 0 : index
    %9 = vector.load %arg5[%c0_9, %c0_10] : memref<32x96xf32, #tpu.memory_space<vmem>>, vector<32x96xf32>
    %cst_11 = arith.constant dense<0.000000e+00> : vector<16x96xf32>
    %10 = tpu.matmul %7, %9, %cst_11 {dimension_numbers = #tpu.dot_dimension_numbers<[1], [0], [0], [1], [0, 0, 1, 1], [], []>} : vector<16x32xf32>, vector<32x96xf32>, vector<16x96xf32> -> vector<16x96xf32>
    %c0_12 = arith.constant 0 : index
    %c0_13 = arith.constant 0 : index
    %11 = vector.load %arg6[%c0_12, %c0_13] : memref<1x96xf32, #tpu.memory_space<vmem>>, vector<1x96xf32>
    %12 = vector.broadcast %11 : vector<1x96xf32> to vector<16x96xf32>
    %13 = arith.addf %10, %12 : vector<16x96xf32>
    %c0_14 = arith.constant 0 : index
    %c0_15 = arith.constant 0 : index
    %14 = vector.load %arg7[%c0_14, %c0_15] : memref<32x32xf32, #tpu.memory_space<vmem>>, vector<32x32xf32>
    %15 = vector.extract_strided_slice %13 {offsets = [0, 0], sizes = [8, 8], strides = [1, 1]} : vector<16x96xf32> to vector<8x8xf32>
    %cst_16 = arith.constant 0.353553385 : f32
    %16 = vector.broadcast %cst_16 : f32 to vector<8x8xf32>
    %17 = arith.mulf %15, %16 : vector<8x8xf32>
    %18 = vector.extract_strided_slice %13 {offsets = [0, 32], sizes = [8, 8], strides = [1, 1]} : vector<16x96xf32> to vector<8x8xf32>
    %19 = vector.extract_strided_slice %13 {offsets = [0, 64], sizes = [8, 8], strides = [1, 1]} : vector<16x96xf32> to vector<8x8xf32>
    %cst_17 = arith.constant dense<0.000000e+00> : vector<8x8xf32>
    %20 = tpu.matmul %17, %18, %cst_17 {dimension_numbers = #tpu.dot_dimension_numbers<[1], [1], [0], [0], [0, 0, 1, 0], [], []>} : vector<8x8xf32>, vector<8x8xf32>, vector<8x8xf32> -> vector<8x8xf32>
    %21 = arith.addf %20, %8 : vector<8x8xf32>
    %cst_18 = arith.constant dense<0xFF800000> : vector<8xf32>
    %22 = vector.multi_reduction <maximumf>, %21, %cst_18 [1] : vector<8x8xf32> to vector<8xf32>
    %23 = vector.shape_cast %22 : vector<8xf32> to vector<8x1xf32>
    %24 = vector.broadcast %23 : vector<8x1xf32> to vector<8x8xf32>
    %25 = arith.subf %21, %24 : vector<8x8xf32>
    %26 = math.exp %25 : vector<8x8xf32>
    %cst_19 = arith.constant dense<0.000000e+00> : vector<8xf32>
    %27 = vector.multi_reduction <add>, %26, %cst_19 [1] : vector<8x8xf32> to vector<8xf32>
    %28 = vector.shape_cast %27 : vector<8xf32> to vector<8x1xf32>
    %29 = tpu.reciprocal %28 {approx = true} : vector<8x1xf32> -> vector<8x1xf32>
    %30 = vector.broadcast %29 : vector<8x1xf32> to vector<8x8xf32>
    %31 = arith.mulf %26, %30 : vector<8x8xf32>
    %cst_20 = arith.constant dense<0.000000e+00> : vector<8x8xf32>
    %32 = tpu.matmul %31, %19, %cst_20 {dimension_numbers = #tpu.dot_dimension_numbers<[1], [0], [0], [1], [0, 0, 1, 1], [], []>} : vector<8x8xf32>, vector<8x8xf32>, vector<8x8xf32> -> vector<8x8xf32>
    %33 = vector.extract_strided_slice %14 {offsets = [0, 0], sizes = [8, 32], strides = [1, 1]} : vector<32x32xf32> to vector<8x32xf32>
    %cst_21 = arith.constant dense<0.000000e+00> : vector<8x32xf32>
    %34 = tpu.matmul %32, %33, %cst_21 {dimension_numbers = #tpu.dot_dimension_numbers<[1], [0], [0], [1], [0, 0, 1, 1], [], []>} : vector<8x8xf32>, vector<8x32xf32>, vector<8x32xf32> -> vector<8x32xf32>
    %35 = vector.extract_strided_slice %13 {offsets = [0, 8], sizes = [8, 8], strides = [1, 1]} : vector<16x96xf32> to vector<8x8xf32>
    %cst_22 = arith.constant 0.353553385 : f32
    %36 = vector.broadcast %cst_22 : f32 to vector<8x8xf32>
    %37 = arith.mulf %35, %36 : vector<8x8xf32>
    %38 = vector.extract_strided_slice %13 {offsets = [0, 40], sizes = [8, 8], strides = [1, 1]} : vector<16x96xf32> to vector<8x8xf32>
    %39 = vector.extract_strided_slice %13 {offsets = [0, 72], sizes = [8, 8], strides = [1, 1]} : vector<16x96xf32> to vector<8x8xf32>
    %cst_23 = arith.constant dense<0.000000e+00> : vector<8x8xf32>
    %40 = tpu.matmul %37, %38, %cst_23 {dimension_numbers = #tpu.dot_dimension_numbers<[1], [1], [0], [0], [0, 0, 1, 0], [], []>} : vector<8x8xf32>, vector<8x8xf32>, vector<8x8xf32> -> vector<8x8xf32>
    %41 = arith.addf %40, %8 : vector<8x8xf32>
    %cst_24 = arith.constant dense<0xFF800000> : vector<8xf32>
    %42 = vector.multi_reduction <maximumf>, %41, %cst_24 [1] : vector<8x8xf32> to vector<8xf32>
    %43 = vector.shape_cast %42 : vector<8xf32> to vector<8x1xf32>
    %44 = vector.broadcast %43 : vector<8x1xf32> to vector<8x8xf32>
    %45 = arith.subf %41, %44 : vector<8x8xf32>
    %46 = math.exp %45 : vector<8x8xf32>
    %cst_25 = arith.constant dense<0.000000e+00> : vector<8xf32>
    %47 = vector.multi_reduction <add>, %46, %cst_25 [1] : vector<8x8xf32> to vector<8xf32>
    %48 = vector.shape_cast %47 : vector<8xf32> to vector<8x1xf32>
    %49 = tpu.reciprocal %48 {approx = true} : vector<8x1xf32> -> vector<8x1xf32>
    %50 = vector.broadcast %49 : vector<8x1xf32> to vector<8x8xf32>
    %51 = arith.mulf %46, %50 : vector<8x8xf32>
    %cst_26 = arith.constant dense<0.000000e+00> : vector<8x8xf32>
    %52 = tpu.matmul %51, %39, %cst_26 {dimension_numbers = #tpu.dot_dimension_numbers<[1], [0], [0], [1], [0, 0, 1, 1], [], []>} : vector<8x8xf32>, vector<8x8xf32>, vector<8x8xf32> -> vector<8x8xf32>
    %53 = vector.extract_strided_slice %14 {offsets = [8, 0], sizes = [8, 32], strides = [1, 1]} : vector<32x32xf32> to vector<8x32xf32>
    %cst_27 = arith.constant dense<0.000000e+00> : vector<8x32xf32>
    %54 = tpu.matmul %52, %53, %cst_27 {dimension_numbers = #tpu.dot_dimension_numbers<[1], [0], [0], [1], [0, 0, 1, 1], [], []>} : vector<8x8xf32>, vector<8x32xf32>, vector<8x32xf32> -> vector<8x32xf32>
    %55 = arith.addf %34, %54 : vector<8x32xf32>
    %56 = vector.extract_strided_slice %13 {offsets = [0, 16], sizes = [8, 8], strides = [1, 1]} : vector<16x96xf32> to vector<8x8xf32>
    %cst_28 = arith.constant 0.353553385 : f32
    %57 = vector.broadcast %cst_28 : f32 to vector<8x8xf32>
    %58 = arith.mulf %56, %57 : vector<8x8xf32>
    %59 = vector.extract_strided_slice %13 {offsets = [0, 48], sizes = [8, 8], strides = [1, 1]} : vector<16x96xf32> to vector<8x8xf32>
    %60 = vector.extract_strided_slice %13 {offsets = [0, 80], sizes = [8, 8], strides = [1, 1]} : vector<16x96xf32> to vector<8x8xf32>
    %cst_29 = arith.constant dense<0.000000e+00> : vector<8x8xf32>
    %61 = tpu.matmul %58, %59, %cst_29 {dimension_numbers = #tpu.dot_dimension_numbers<[1], [1], [0], [0], [0, 0, 1, 0], [], []>} : vector<8x8xf32>, vector<8x8xf32>, vector<8x8xf32> -> vector<8x8xf32>
    %62 = arith.addf %61, %8 : vector<8x8xf32>
    %cst_30 = arith.constant dense<0xFF800000> : vector<8xf32>
    %63 = vector.multi_reduction <maximumf>, %62, %cst_30 [1] : vector<8x8xf32> to vector<8xf32>
    %64 = vector.shape_cast %63 : vector<8xf32> to vector<8x1xf32>
    %65 = vector.broadcast %64 : vector<8x1xf32> to vector<8x8xf32>
    %66 = arith.subf %62, %65 : vector<8x8xf32>
    %67 = math.exp %66 : vector<8x8xf32>
    %cst_31 = arith.constant dense<0.000000e+00> : vector<8xf32>
    %68 = vector.multi_reduction <add>, %67, %cst_31 [1] : vector<8x8xf32> to vector<8xf32>
    %69 = vector.shape_cast %68 : vector<8xf32> to vector<8x1xf32>
    %70 = tpu.reciprocal %69 {approx = true} : vector<8x1xf32> -> vector<8x1xf32>
    %71 = vector.broadcast %70 : vector<8x1xf32> to vector<8x8xf32>
    %72 = arith.mulf %67, %71 : vector<8x8xf32>
    %cst_32 = arith.constant dense<0.000000e+00> : vector<8x8xf32>
    %73 = tpu.matmul %72, %60, %cst_32 {dimension_numbers = #tpu.dot_dimension_numbers<[1], [0], [0], [1], [0, 0, 1, 1], [], []>} : vector<8x8xf32>, vector<8x8xf32>, vector<8x8xf32> -> vector<8x8xf32>
    %74 = vector.extract_strided_slice %14 {offsets = [16, 0], sizes = [8, 32], strides = [1, 1]} : vector<32x32xf32> to vector<8x32xf32>
    %cst_33 = arith.constant dense<0.000000e+00> : vector<8x32xf32>
    %75 = tpu.matmul %73, %74, %cst_33 {dimension_numbers = #tpu.dot_dimension_numbers<[1], [0], [0], [1], [0, 0, 1, 1], [], []>} : vector<8x8xf32>, vector<8x32xf32>, vector<8x32xf32> -> vector<8x32xf32>
    %76 = arith.addf %55, %75 : vector<8x32xf32>
    %77 = vector.extract_strided_slice %13 {offsets = [0, 24], sizes = [8, 8], strides = [1, 1]} : vector<16x96xf32> to vector<8x8xf32>
    %cst_34 = arith.constant 0.353553385 : f32
    %78 = vector.broadcast %cst_34 : f32 to vector<8x8xf32>
    %79 = arith.mulf %77, %78 : vector<8x8xf32>
    %80 = vector.extract_strided_slice %13 {offsets = [0, 56], sizes = [8, 8], strides = [1, 1]} : vector<16x96xf32> to vector<8x8xf32>
    %81 = vector.extract_strided_slice %13 {offsets = [0, 88], sizes = [8, 8], strides = [1, 1]} : vector<16x96xf32> to vector<8x8xf32>
    %cst_35 = arith.constant dense<0.000000e+00> : vector<8x8xf32>
    %82 = tpu.matmul %79, %80, %cst_35 {dimension_numbers = #tpu.dot_dimension_numbers<[1], [1], [0], [0], [0, 0, 1, 0], [], []>} : vector<8x8xf32>, vector<8x8xf32>, vector<8x8xf32> -> vector<8x8xf32>
    %83 = arith.addf %82, %8 : vector<8x8xf32>
    %cst_36 = arith.constant dense<0xFF800000> : vector<8xf32>
    %84 = vector.multi_reduction <maximumf>, %83, %cst_36 [1] : vector<8x8xf32> to vector<8xf32>
    %85 = vector.shape_cast %84 : vector<8xf32> to vector<8x1xf32>
    %86 = vector.broadcast %85 : vector<8x1xf32> to vector<8x8xf32>
    %87 = arith.subf %83, %86 : vector<8x8xf32>
    %88 = math.exp %87 : vector<8x8xf32>
    %cst_37 = arith.constant dense<0.000000e+00> : vector<8xf32>
    %89 = vector.multi_reduction <add>, %88, %cst_37 [1] : vector<8x8xf32> to vector<8xf32>
    %90 = vector.shape_cast %89 : vector<8xf32> to vector<8x1xf32>
    %91 = tpu.reciprocal %90 {approx = true} : vector<8x1xf32> -> vector<8x1xf32>
    %92 = vector.broadcast %91 : vector<8x1xf32> to vector<8x8xf32>
    %93 = arith.mulf %88, %92 : vector<8x8xf32>
    %cst_38 = arith.constant dense<0.000000e+00> : vector<8x8xf32>
    %94 = tpu.matmul %93, %81, %cst_38 {dimension_numbers = #tpu.dot_dimension_numbers<[1], [0], [0], [1], [0, 0, 1, 1], [], []>} : vector<8x8xf32>, vector<8x8xf32>, vector<8x8xf32> -> vector<8x8xf32>
    %95 = vector.extract_strided_slice %14 {offsets = [24, 0], sizes = [8, 32], strides = [1, 1]} : vector<32x32xf32> to vector<8x32xf32>
    %cst_39 = arith.constant dense<0.000000e+00> : vector<8x32xf32>
    %96 = tpu.matmul %94, %95, %cst_39 {dimension_numbers = #tpu.dot_dimension_numbers<[1], [0], [0], [1], [0, 0, 1, 1], [], []>} : vector<8x8xf32>, vector<8x32xf32>, vector<8x32xf32> -> vector<8x32xf32>
    %97 = arith.addf %76, %96 : vector<8x32xf32>
    %c0_40 = arith.constant 0 : index
    %c0_41 = arith.constant 0 : index
    %98 = vector.load %arg8[%c0_40, %c0_41] : memref<1x32xf32, #tpu.memory_space<vmem>>, vector<1x32xf32>
    %99 = vector.broadcast %98 : vector<1x32xf32> to vector<8x32xf32>
    %100 = arith.addf %97, %99 : vector<8x32xf32>
    %101 = vector.extract_strided_slice %13 {offsets = [8, 0], sizes = [8, 8], strides = [1, 1]} : vector<16x96xf32> to vector<8x8xf32>
    %cst_42 = arith.constant 0.353553385 : f32
    %102 = vector.broadcast %cst_42 : f32 to vector<8x8xf32>
    %103 = arith.mulf %101, %102 : vector<8x8xf32>
    %104 = vector.extract_strided_slice %13 {offsets = [8, 32], sizes = [8, 8], strides = [1, 1]} : vector<16x96xf32> to vector<8x8xf32>
    %105 = vector.extract_strided_slice %13 {offsets = [8, 64], sizes = [8, 8], strides = [1, 1]} : vector<16x96xf32> to vector<8x8xf32>
    %cst_43 = arith.constant dense<0.000000e+00> : vector<8x8xf32>
    %106 = tpu.matmul %103, %104, %cst_43 {dimension_numbers = #tpu.dot_dimension_numbers<[1], [1], [0], [0], [0, 0, 1, 0], [], []>} : vector<8x8xf32>, vector<8x8xf32>, vector<8x8xf32> -> vector<8x8xf32>
    %107 = arith.addf %106, %8 : vector<8x8xf32>
    %cst_44 = arith.constant dense<0xFF800000> : vector<8xf32>
    %108 = vector.multi_reduction <maximumf>, %107, %cst_44 [1] : vector<8x8xf32> to vector<8xf32>
    %109 = vector.shape_cast %108 : vector<8xf32> to vector<8x1xf32>
    %110 = vector.broadcast %109 : vector<8x1xf32> to vector<8x8xf32>
    %111 = arith.subf %107, %110 : vector<8x8xf32>
    %112 = math.exp %111 : vector<8x8xf32>
    %cst_45 = arith.constant dense<0.000000e+00> : vector<8xf32>
    %113 = vector.multi_reduction <add>, %112, %cst_45 [1] : vector<8x8xf32> to vector<8xf32>
    %114 = vector.shape_cast %113 : vector<8xf32> to vector<8x1xf32>
    %115 = tpu.reciprocal %114 {approx = true} : vector<8x1xf32> -> vector<8x1xf32>
    %116 = vector.broadcast %115 : vector<8x1xf32> to vector<8x8xf32>
    %117 = arith.mulf %112, %116 : vector<8x8xf32>
    %cst_46 = arith.constant dense<0.000000e+00> : vector<8x8xf32>
    %118 = tpu.matmul %117, %105, %cst_46 {dimension_numbers = #tpu.dot_dimension_numbers<[1], [0], [0], [1], [0, 0, 1, 1], [], []>} : vector<8x8xf32>, vector<8x8xf32>, vector<8x8xf32> -> vector<8x8xf32>
    %119 = vector.extract_strided_slice %14 {offsets = [0, 0], sizes = [8, 32], strides = [1, 1]} : vector<32x32xf32> to vector<8x32xf32>
    %cst_47 = arith.constant dense<0.000000e+00> : vector<8x32xf32>
    %120 = tpu.matmul %118, %119, %cst_47 {dimension_numbers = #tpu.dot_dimension_numbers<[1], [0], [0], [1], [0, 0, 1, 1], [], []>} : vector<8x8xf32>, vector<8x32xf32>, vector<8x32xf32> -> vector<8x32xf32>
    %121 = vector.extract_strided_slice %13 {offsets = [8, 8], sizes = [8, 8], strides = [1, 1]} : vector<16x96xf32> to vector<8x8xf32>
    %cst_48 = arith.constant 0.353553385 : f32
    %122 = vector.broadcast %cst_48 : f32 to vector<8x8xf32>
    %123 = arith.mulf %121, %122 : vector<8x8xf32>
    %124 = vector.extract_strided_slice %13 {offsets = [8, 40], sizes = [8, 8], strides = [1, 1]} : vector<16x96xf32> to vector<8x8xf32>
    %125 = vector.extract_strided_slice %13 {offsets = [8, 72], sizes = [8, 8], strides = [1, 1]} : vector<16x96xf32> to vector<8x8xf32>
    %cst_49 = arith.constant dense<0.000000e+00> : vector<8x8xf32>
    %126 = tpu.matmul %123, %124, %cst_49 {dimension_numbers = #tpu.dot_dimension_numbers<[1], [1], [0], [0], [0, 0, 1, 0], [], []>} : vector<8x8xf32>, vector<8x8xf32>, vector<8x8xf32> -> vector<8x8xf32>
    %127 = arith.addf %126, %8 : vector<8x8xf32>
    %cst_50 = arith.constant dense<0xFF800000> : vector<8xf32>
    %128 = vector.multi_reduction <maximumf>, %127, %cst_50 [1] : vector<8x8xf32> to vector<8xf32>
    %129 = vector.shape_cast %128 : vector<8xf32> to vector<8x1xf32>
    %130 = vector.broadcast %129 : vector<8x1xf32> to vector<8x8xf32>
    %131 = arith.subf %127, %130 : vector<8x8xf32>
    %132 = math.exp %131 : vector<8x8xf32>
    %cst_51 = arith.constant dense<0.000000e+00> : vector<8xf32>
    %133 = vector.multi_reduction <add>, %132, %cst_51 [1] : vector<8x8xf32> to vector<8xf32>
    %134 = vector.shape_cast %133 : vector<8xf32> to vector<8x1xf32>
    %135 = tpu.reciprocal %134 {approx = true} : vector<8x1xf32> -> vector<8x1xf32>
    %136 = vector.broadcast %135 : vector<8x1xf32> to vector<8x8xf32>
    %137 = arith.mulf %132, %136 : vector<8x8xf32>
    %cst_52 = arith.constant dense<0.000000e+00> : vector<8x8xf32>
    %138 = tpu.matmul %137, %125, %cst_52 {dimension_numbers = #tpu.dot_dimension_numbers<[1], [0], [0], [1], [0, 0, 1, 1], [], []>} : vector<8x8xf32>, vector<8x8xf32>, vector<8x8xf32> -> vector<8x8xf32>
    %139 = vector.extract_strided_slice %14 {offsets = [8, 0], sizes = [8, 32], strides = [1, 1]} : vector<32x32xf32> to vector<8x32xf32>
    %cst_53 = arith.constant dense<0.000000e+00> : vector<8x32xf32>
    %140 = tpu.matmul %138, %139, %cst_53 {dimension_numbers = #tpu.dot_dimension_numbers<[1], [0], [0], [1], [0, 0, 1, 1], [], []>} : vector<8x8xf32>, vector<8x32xf32>, vector<8x32xf32> -> vector<8x32xf32>
    %141 = arith.addf %120, %140 : vector<8x32xf32>
    %142 = vector.extract_strided_slice %13 {offsets = [8, 16], sizes = [8, 8], strides = [1, 1]} : vector<16x96xf32> to vector<8x8xf32>
    %cst_54 = arith.constant 0.353553385 : f32
    %143 = vector.broadcast %cst_54 : f32 to vector<8x8xf32>
    %144 = arith.mulf %142, %143 : vector<8x8xf32>
    %145 = vector.extract_strided_slice %13 {offsets = [8, 48], sizes = [8, 8], strides = [1, 1]} : vector<16x96xf32> to vector<8x8xf32>
    %146 = vector.extract_strided_slice %13 {offsets = [8, 80], sizes = [8, 8], strides = [1, 1]} : vector<16x96xf32> to vector<8x8xf32>
    %cst_55 = arith.constant dense<0.000000e+00> : vector<8x8xf32>
    %147 = tpu.matmul %144, %145, %cst_55 {dimension_numbers = #tpu.dot_dimension_numbers<[1], [1], [0], [0], [0, 0, 1, 0], [], []>} : vector<8x8xf32>, vector<8x8xf32>, vector<8x8xf32> -> vector<8x8xf32>
    %148 = arith.addf %147, %8 : vector<8x8xf32>
    %cst_56 = arith.constant dense<0xFF800000> : vector<8xf32>
    %149 = vector.multi_reduction <maximumf>, %148, %cst_56 [1] : vector<8x8xf32> to vector<8xf32>
    %150 = vector.shape_cast %149 : vector<8xf32> to vector<8x1xf32>
    %151 = vector.broadcast %150 : vector<8x1xf32> to vector<8x8xf32>
    %152 = arith.subf %148, %151 : vector<8x8xf32>
    %153 = math.exp %152 : vector<8x8xf32>
    %cst_57 = arith.constant dense<0.000000e+00> : vector<8xf32>
    %154 = vector.multi_reduction <add>, %153, %cst_57 [1] : vector<8x8xf32> to vector<8xf32>
    %155 = vector.shape_cast %154 : vector<8xf32> to vector<8x1xf32>
    %156 = tpu.reciprocal %155 {approx = true} : vector<8x1xf32> -> vector<8x1xf32>
    %157 = vector.broadcast %156 : vector<8x1xf32> to vector<8x8xf32>
    %158 = arith.mulf %153, %157 : vector<8x8xf32>
    %cst_58 = arith.constant dense<0.000000e+00> : vector<8x8xf32>
    %159 = tpu.matmul %158, %146, %cst_58 {dimension_numbers = #tpu.dot_dimension_numbers<[1], [0], [0], [1], [0, 0, 1, 1], [], []>} : vector<8x8xf32>, vector<8x8xf32>, vector<8x8xf32> -> vector<8x8xf32>
    %160 = vector.extract_strided_slice %14 {offsets = [16, 0], sizes = [8, 32], strides = [1, 1]} : vector<32x32xf32> to vector<8x32xf32>
    %cst_59 = arith.constant dense<0.000000e+00> : vector<8x32xf32>
    %161 = tpu.matmul %159, %160, %cst_59 {dimension_numbers = #tpu.dot_dimension_numbers<[1], [0], [0], [1], [0, 0, 1, 1], [], []>} : vector<8x8xf32>, vector<8x32xf32>, vector<8x32xf32> -> vector<8x32xf32>
    %162 = arith.addf %141, %161 : vector<8x32xf32>
    %163 = vector.extract_strided_slice %13 {offsets = [8, 24], sizes = [8, 8], strides = [1, 1]} : vector<16x96xf32> to vector<8x8xf32>
    %cst_60 = arith.constant 0.353553385 : f32
    %164 = vector.broadcast %cst_60 : f32 to vector<8x8xf32>
    %165 = arith.mulf %163, %164 : vector<8x8xf32>
    %166 = vector.extract_strided_slice %13 {offsets = [8, 56], sizes = [8, 8], strides = [1, 1]} : vector<16x96xf32> to vector<8x8xf32>
    %167 = vector.extract_strided_slice %13 {offsets = [8, 88], sizes = [8, 8], strides = [1, 1]} : vector<16x96xf32> to vector<8x8xf32>
    %cst_61 = arith.constant dense<0.000000e+00> : vector<8x8xf32>
    %168 = tpu.matmul %165, %166, %cst_61 {dimension_numbers = #tpu.dot_dimension_numbers<[1], [1], [0], [0], [0, 0, 1, 0], [], []>} : vector<8x8xf32>, vector<8x8xf32>, vector<8x8xf32> -> vector<8x8xf32>
    %169 = arith.addf %168, %8 : vector<8x8xf32>
    %cst_62 = arith.constant dense<0xFF800000> : vector<8xf32>
    %170 = vector.multi_reduction <maximumf>, %169, %cst_62 [1] : vector<8x8xf32> to vector<8xf32>
    %171 = vector.shape_cast %170 : vector<8xf32> to vector<8x1xf32>
    %172 = vector.broadcast %171 : vector<8x1xf32> to vector<8x8xf32>
    %173 = arith.subf %169, %172 : vector<8x8xf32>
    %174 = math.exp %173 : vector<8x8xf32>
    %cst_63 = arith.constant dense<0.000000e+00> : vector<8xf32>
    %175 = vector.multi_reduction <add>, %174, %cst_63 [1] : vector<8x8xf32> to vector<8xf32>
    %176 = vector.shape_cast %175 : vector<8xf32> to vector<8x1xf32>
    %177 = tpu.reciprocal %176 {approx = true} : vector<8x1xf32> -> vector<8x1xf32>
    %178 = vector.broadcast %177 : vector<8x1xf32> to vector<8x8xf32>
    %179 = arith.mulf %174, %178 : vector<8x8xf32>
    %cst_64 = arith.constant dense<0.000000e+00> : vector<8x8xf32>
    %180 = tpu.matmul %179, %167, %cst_64 {dimension_numbers = #tpu.dot_dimension_numbers<[1], [0], [0], [1], [0, 0, 1, 1], [], []>} : vector<8x8xf32>, vector<8x8xf32>, vector<8x8xf32> -> vector<8x8xf32>
    %181 = vector.extract_strided_slice %14 {offsets = [24, 0], sizes = [8, 32], strides = [1, 1]} : vector<32x32xf32> to vector<8x32xf32>
    %cst_65 = arith.constant dense<0.000000e+00> : vector<8x32xf32>
    %182 = tpu.matmul %180, %181, %cst_65 {dimension_numbers = #tpu.dot_dimension_numbers<[1], [0], [0], [1], [0, 0, 1, 1], [], []>} : vector<8x8xf32>, vector<8x32xf32>, vector<8x32xf32> -> vector<8x32xf32>
    %183 = arith.addf %162, %182 : vector<8x32xf32>
    %c0_66 = arith.constant 0 : index
    %c0_67 = arith.constant 0 : index
    %184 = vector.load %arg8[%c0_66, %c0_67] : memref<1x32xf32, #tpu.memory_space<vmem>>, vector<1x32xf32>
    %185 = vector.broadcast %184 : vector<1x32xf32> to vector<8x32xf32>
    %186 = arith.addf %183, %185 : vector<8x32xf32>
    %187 = tpu.concatenate %100, %186 in 0 : vector<8x32xf32>, vector<8x32xf32> -> vector<16x32xf32>
    %188 = arith.addf %7, %187 : vector<16x32xf32>
    %c0_68 = arith.constant 0 : index
    %c0_69 = arith.constant 0 : index
    %189 = vector.load %arg9[%c0_68, %c0_69] : memref<1x32xf32, #tpu.memory_space<vmem>>, vector<1x32xf32>
    %c0_70 = arith.constant 0 : index
    %c0_71 = arith.constant 0 : index
    %190 = vector.load %arg10[%c0_70, %c0_71] : memref<1x32xf32, #tpu.memory_space<vmem>>, vector<1x32xf32>
    %cst_72 = arith.constant dense<0.000000e+00> : vector<16xf32>
    %191 = vector.multi_reduction <add>, %188, %cst_72 [1] : vector<16x32xf32> to vector<16xf32>
    %192 = vector.shape_cast %191 : vector<16xf32> to vector<16x1xf32>
    %cst_73 = arith.constant 3.200000e+01 : f32
    %193 = vector.broadcast %cst_73 : f32 to vector<16x1xf32>
    %194 = arith.divf %192, %193 : vector<16x1xf32>
    %195 = vector.broadcast %194 : vector<16x1xf32> to vector<16x32xf32>
    %196 = arith.subf %188, %195 : vector<16x32xf32>
    %197 = arith.mulf %196, %196 : vector<16x32xf32>
    %cst_74 = arith.constant dense<0.000000e+00> : vector<16xf32>
    %198 = vector.multi_reduction <add>, %197, %cst_74 [1] : vector<16x32xf32> to vector<16xf32>
    %199 = vector.shape_cast %198 : vector<16xf32> to vector<16x1xf32>
    %cst_75 = arith.constant 3.200000e+01 : f32
    %200 = vector.broadcast %cst_75 : f32 to vector<16x1xf32>
    %201 = arith.divf %199, %200 : vector<16x1xf32>
    %202 = vector.broadcast %194 : vector<16x1xf32> to vector<16x32xf32>
    %203 = arith.subf %188, %202 : vector<16x32xf32>
    %cst_76 = arith.constant 9.99999974E-6 : f32
    %204 = vector.broadcast %cst_76 : f32 to vector<16x1xf32>
    %205 = arith.addf %201, %204 : vector<16x1xf32>
    %206 = math.rsqrt %205 : vector<16x1xf32>
    %207 = vector.broadcast %206 : vector<16x1xf32> to vector<16x32xf32>
    %208 = arith.mulf %203, %207 : vector<16x32xf32>
    %209 = vector.broadcast %189 : vector<1x32xf32> to vector<16x32xf32>
    %210 = arith.mulf %208, %209 : vector<16x32xf32>
    %211 = vector.broadcast %190 : vector<1x32xf32> to vector<16x32xf32>
    %212 = arith.addf %210, %211 : vector<16x32xf32>
    %c0_77 = arith.constant 0 : index
    %c0_78 = arith.constant 0 : index
    %213 = vector.load %arg11[%c0_77, %c0_78] : memref<32x64xf32, #tpu.memory_space<vmem>>, vector<32x64xf32>
    %cst_79 = arith.constant dense<0.000000e+00> : vector<16x64xf32>
    %214 = tpu.matmul %212, %213, %cst_79 {dimension_numbers = #tpu.dot_dimension_numbers<[1], [0], [0], [1], [0, 0, 1, 1], [], []>} : vector<16x32xf32>, vector<32x64xf32>, vector<16x64xf32> -> vector<16x64xf32>
    %c0_80 = arith.constant 0 : index
    %c0_81 = arith.constant 0 : index
    %215 = vector.load %arg12[%c0_80, %c0_81] : memref<1x64xf32, #tpu.memory_space<vmem>>, vector<1x64xf32>
    %216 = vector.broadcast %215 : vector<1x64xf32> to vector<16x64xf32>
    %217 = arith.addf %214, %216 : vector<16x64xf32>
    %cst_82 = arith.constant 0.000000e+00 : f32
    %218 = vector.broadcast %cst_82 : f32 to vector<16x64xf32>
    %219 = arith.maximumf %217, %218 : vector<16x64xf32>
    %c0_83 = arith.constant 0 : index
    %c0_84 = arith.constant 0 : index
    %220 = vector.load %arg13[%c0_83, %c0_84] : memref<64x32xf32, #tpu.memory_space<vmem>>, vector<64x32xf32>
    %cst_85 = arith.constant dense<0.000000e+00> : vector<16x32xf32>
    %221 = tpu.matmul %219, %220, %cst_85 {dimension_numbers = #tpu.dot_dimension_numbers<[1], [0], [0], [1], [0, 0, 1, 1], [], []>} : vector<16x64xf32>, vector<64x32xf32>, vector<16x32xf32> -> vector<16x32xf32>
    %c0_86 = arith.constant 0 : index
    %c0_87 = arith.constant 0 : index
    %222 = vector.load %arg14[%c0_86, %c0_87] : memref<1x32xf32, #tpu.memory_space<vmem>>, vector<1x32xf32>
    %223 = vector.broadcast %222 : vector<1x32xf32> to vector<16x32xf32>
    %224 = arith.addf %221, %223 : vector<16x32xf32>
    %225 = arith.addf %212, %224 : vector<16x32xf32>
    %c0_88 = arith.constant 0 : index
    %c0_89 = arith.constant 0 : index
    %226 = vector.load %arg15[%c0_88, %c0_89] : memref<1x32xf32, #tpu.memory_space<vmem>>, vector<1x32xf32>
    %c0_90 = arith.constant 0 : index
    %c0_91 = arith.constant 0 : index
    %227 = vector.load %arg16[%c0_90, %c0_91] : memref<1x32xf32, #tpu.memory_space<vmem>>, vector<1x32xf32>
    %cst_92 = arith.constant dense<0.000000e+00> : vector<16xf32>
    %228 = vector.multi_reduction <add>, %225, %cst_92 [1] : vector<16x32xf32> to vector<16xf32>
    %229 = vector.shape_cast %228 : vector<16xf32> to vector<16x1xf32>
    %cst_93 = arith.constant 3.200000e+01 : f32
    %230 = vector.broadcast %cst_93 : f32 to vector<16x1xf32>
    %231 = arith.divf %229, %230 : vector<16x1xf32>
    %232 = vector.broadcast %231 : vector<16x1xf32> to vector<16x32xf32>
    %233 = arith.subf %225, %232 : vector<16x32xf32>
    %234 = arith.mulf %233, %233 : vector<16x32xf32>
    %cst_94 = arith.constant dense<0.000000e+00> : vector<16xf32>
    %235 = vector.multi_reduction <add>, %234, %cst_94 [1] : vector<16x32xf32> to vector<16xf32>
    %236 = vector.shape_cast %235 : vector<16xf32> to vector<16x1xf32>
    %cst_95 = arith.constant 3.200000e+01 : f32
    %237 = vector.broadcast %cst_95 : f32 to vector<16x1xf32>
    %238 = arith.divf %236, %237 : vector<16x1xf32>
    %239 = vector.broadcast %231 : vector<16x1xf32> to vector<16x32xf32>
    %240 = arith.subf %225, %239 : vector<16x32xf32>
    %cst_96 = arith.constant 9.99999974E-6 : f32
    %241 = vector.broadcast %cst_96 : f32 to vector<16x1xf32>
    %242 = arith.addf %238, %241 : vector<16x1xf32>
    %243 = math.rsqrt %242 : vector<16x1xf32>
    %244 = vector.broadcast %243 : vector<16x1xf32> to vector<16x32xf32>
    %245 = arith.mulf %240, %244 : vector<16x32xf32>
    %246 = vector.broadcast %226 : vector<1x32xf32> to vector<16x32xf32>
    %247 = arith.mulf %245, %246 : vector<16x32xf32>
    %248 = vector.broadcast %227 : vector<1x32xf32> to vector<16x32xf32>
    %249 = arith.addf %247, %248 : vector<16x32xf32>
    %c0_97 = arith.constant 0 : index
    %c0_98 = arith.constant 0 : index
    %250 = vector.load %arg17[%c0_97, %c0_98] : memref<32x96xf32, #tpu.memory_space<vmem>>, vector<32x96xf32>
    %cst_99 = arith.constant dense<0.000000e+00> : vector<16x96xf32>
    %251 = tpu.matmul %249, %250, %cst_99 {dimension_numbers = #tpu.dot_dimension_numbers<[1], [0], [0], [1], [0, 0, 1, 1], [], []>} : vector<16x32xf32>, vector<32x96xf32>, vector<16x96xf32> -> vector<16x96xf32>
    %c0_100 = arith.constant 0 : index
    %c0_101 = arith.constant 0 : index
    %252 = vector.load %arg18[%c0_100, %c0_101] : memref<1x96xf32, #tpu.memory_space<vmem>>, vector<1x96xf32>
    %253 = vector.broadcast %252 : vector<1x96xf32> to vector<16x96xf32>
    %254 = arith.addf %251, %253 : vector<16x96xf32>
    %c0_102 = arith.constant 0 : index
    %c0_103 = arith.constant 0 : index
    %255 = vector.load %arg19[%c0_102, %c0_103] : memref<32x32xf32, #tpu.memory_space<vmem>>, vector<32x32xf32>
    %256 = vector.extract_strided_slice %254 {offsets = [0, 0], sizes = [8, 8], strides = [1, 1]} : vector<16x96xf32> to vector<8x8xf32>
    %cst_104 = arith.constant 0.353553385 : f32
    %257 = vector.broadcast %cst_104 : f32 to vector<8x8xf32>
    %258 = arith.mulf %256, %257 : vector<8x8xf32>
    %259 = vector.extract_strided_slice %254 {offsets = [0, 32], sizes = [8, 8], strides = [1, 1]} : vector<16x96xf32> to vector<8x8xf32>
    %260 = vector.extract_strided_slice %254 {offsets = [0, 64], sizes = [8, 8], strides = [1, 1]} : vector<16x96xf32> to vector<8x8xf32>
    %cst_105 = arith.constant dense<0.000000e+00> : vector<8x8xf32>
    %261 = tpu.matmul %258, %259, %cst_105 {dimension_numbers = #tpu.dot_dimension_numbers<[1], [1], [0], [0], [0, 0, 1, 0], [], []>} : vector<8x8xf32>, vector<8x8xf32>, vector<8x8xf32> -> vector<8x8xf32>
    %262 = arith.addf %261, %8 : vector<8x8xf32>
    %cst_106 = arith.constant dense<0xFF800000> : vector<8xf32>
    %263 = vector.multi_reduction <maximumf>, %262, %cst_106 [1] : vector<8x8xf32> to vector<8xf32>
    %264 = vector.shape_cast %263 : vector<8xf32> to vector<8x1xf32>
    %265 = vector.broadcast %264 : vector<8x1xf32> to vector<8x8xf32>
    %266 = arith.subf %262, %265 : vector<8x8xf32>
    %267 = math.exp %266 : vector<8x8xf32>
    %cst_107 = arith.constant dense<0.000000e+00> : vector<8xf32>
    %268 = vector.multi_reduction <add>, %267, %cst_107 [1] : vector<8x8xf32> to vector<8xf32>
    %269 = vector.shape_cast %268 : vector<8xf32> to vector<8x1xf32>
    %270 = tpu.reciprocal %269 {approx = true} : vector<8x1xf32> -> vector<8x1xf32>
    %271 = vector.broadcast %270 : vector<8x1xf32> to vector<8x8xf32>
    %272 = arith.mulf %267, %271 : vector<8x8xf32>
    %cst_108 = arith.constant dense<0.000000e+00> : vector<8x8xf32>
    %273 = tpu.matmul %272, %260, %cst_108 {dimension_numbers = #tpu.dot_dimension_numbers<[1], [0], [0], [1], [0, 0, 1, 1], [], []>} : vector<8x8xf32>, vector<8x8xf32>, vector<8x8xf32> -> vector<8x8xf32>
    %274 = vector.extract_strided_slice %255 {offsets = [0, 0], sizes = [8, 32], strides = [1, 1]} : vector<32x32xf32> to vector<8x32xf32>
    %cst_109 = arith.constant dense<0.000000e+00> : vector<8x32xf32>
    %275 = tpu.matmul %273, %274, %cst_109 {dimension_numbers = #tpu.dot_dimension_numbers<[1], [0], [0], [1], [0, 0, 1, 1], [], []>} : vector<8x8xf32>, vector<8x32xf32>, vector<8x32xf32> -> vector<8x32xf32>
    %276 = vector.extract_strided_slice %254 {offsets = [0, 8], sizes = [8, 8], strides = [1, 1]} : vector<16x96xf32> to vector<8x8xf32>
    %cst_110 = arith.constant 0.353553385 : f32
    %277 = vector.broadcast %cst_110 : f32 to vector<8x8xf32>
    %278 = arith.mulf %276, %277 : vector<8x8xf32>
    %279 = vector.extract_strided_slice %254 {offsets = [0, 40], sizes = [8, 8], strides = [1, 1]} : vector<16x96xf32> to vector<8x8xf32>
    %280 = vector.extract_strided_slice %254 {offsets = [0, 72], sizes = [8, 8], strides = [1, 1]} : vector<16x96xf32> to vector<8x8xf32>
    %cst_111 = arith.constant dense<0.000000e+00> : vector<8x8xf32>
    %281 = tpu.matmul %278, %279, %cst_111 {dimension_numbers = #tpu.dot_dimension_numbers<[1], [1], [0], [0], [0, 0, 1, 0], [], []>} : vector<8x8xf32>, vector<8x8xf32>, vector<8x8xf32> -> vector<8x8xf32>
    %282 = arith.addf %281, %8 : vector<8x8xf32>
    %cst_112 = arith.constant dense<0xFF800000> : vector<8xf32>
    %283 = vector.multi_reduction <maximumf>, %282, %cst_112 [1] : vector<8x8xf32> to vector<8xf32>
    %284 = vector.shape_cast %283 : vector<8xf32> to vector<8x1xf32>
    %285 = vector.broadcast %284 : vector<8x1xf32> to vector<8x8xf32>
    %286 = arith.subf %282, %285 : vector<8x8xf32>
    %287 = math.exp %286 : vector<8x8xf32>
    %cst_113 = arith.constant dense<0.000000e+00> : vector<8xf32>
    %288 = vector.multi_reduction <add>, %287, %cst_113 [1] : vector<8x8xf32> to vector<8xf32>
    %289 = vector.shape_cast %288 : vector<8xf32> to vector<8x1xf32>
    %290 = tpu.reciprocal %289 {approx = true} : vector<8x1xf32> -> vector<8x1xf32>
    %291 = vector.broadcast %290 : vector<8x1xf32> to vector<8x8xf32>
    %292 = arith.mulf %287, %291 : vector<8x8xf32>
    %cst_114 = arith.constant dense<0.000000e+00> : vector<8x8xf32>
    %293 = tpu.matmul %292, %280, %cst_114 {dimension_numbers = #tpu.dot_dimension_numbers<[1], [0], [0], [1], [0, 0, 1, 1], [], []>} : vector<8x8xf32>, vector<8x8xf32>, vector<8x8xf32> -> vector<8x8xf32>
    %294 = vector.extract_strided_slice %255 {offsets = [8, 0], sizes = [8, 32], strides = [1, 1]} : vector<32x32xf32> to vector<8x32xf32>
    %cst_115 = arith.constant dense<0.000000e+00> : vector<8x32xf32>
    %295 = tpu.matmul %293, %294, %cst_115 {dimension_numbers = #tpu.dot_dimension_numbers<[1], [0], [0], [1], [0, 0, 1, 1], [], []>} : vector<8x8xf32>, vector<8x32xf32>, vector<8x32xf32> -> vector<8x32xf32>
    %296 = arith.addf %275, %295 : vector<8x32xf32>
    %297 = vector.extract_strided_slice %254 {offsets = [0, 16], sizes = [8, 8], strides = [1, 1]} : vector<16x96xf32> to vector<8x8xf32>
    %cst_116 = arith.constant 0.353553385 : f32
    %298 = vector.broadcast %cst_116 : f32 to vector<8x8xf32>
    %299 = arith.mulf %297, %298 : vector<8x8xf32>
    %300 = vector.extract_strided_slice %254 {offsets = [0, 48], sizes = [8, 8], strides = [1, 1]} : vector<16x96xf32> to vector<8x8xf32>
    %301 = vector.extract_strided_slice %254 {offsets = [0, 80], sizes = [8, 8], strides = [1, 1]} : vector<16x96xf32> to vector<8x8xf32>
    %cst_117 = arith.constant dense<0.000000e+00> : vector<8x8xf32>
    %302 = tpu.matmul %299, %300, %cst_117 {dimension_numbers = #tpu.dot_dimension_numbers<[1], [1], [0], [0], [0, 0, 1, 0], [], []>} : vector<8x8xf32>, vector<8x8xf32>, vector<8x8xf32> -> vector<8x8xf32>
    %303 = arith.addf %302, %8 : vector<8x8xf32>
    %cst_118 = arith.constant dense<0xFF800000> : vector<8xf32>
    %304 = vector.multi_reduction <maximumf>, %303, %cst_118 [1] : vector<8x8xf32> to vector<8xf32>
    %305 = vector.shape_cast %304 : vector<8xf32> to vector<8x1xf32>
    %306 = vector.broadcast %305 : vector<8x1xf32> to vector<8x8xf32>
    %307 = arith.subf %303, %306 : vector<8x8xf32>
    %308 = math.exp %307 : vector<8x8xf32>
    %cst_119 = arith.constant dense<0.000000e+00> : vector<8xf32>
    %309 = vector.multi_reduction <add>, %308, %cst_119 [1] : vector<8x8xf32> to vector<8xf32>
    %310 = vector.shape_cast %309 : vector<8xf32> to vector<8x1xf32>
    %311 = tpu.reciprocal %310 {approx = true} : vector<8x1xf32> -> vector<8x1xf32>
    %312 = vector.broadcast %311 : vector<8x1xf32> to vector<8x8xf32>
    %313 = arith.mulf %308, %312 : vector<8x8xf32>
    %cst_120 = arith.constant dense<0.000000e+00> : vector<8x8xf32>
    %314 = tpu.matmul %313, %301, %cst_120 {dimension_numbers = #tpu.dot_dimension_numbers<[1], [0], [0], [1], [0, 0, 1, 1], [], []>} : vector<8x8xf32>, vector<8x8xf32>, vector<8x8xf32> -> vector<8x8xf32>
    %315 = vector.extract_strided_slice %255 {offsets = [16, 0], sizes = [8, 32], strides = [1, 1]} : vector<32x32xf32> to vector<8x32xf32>
    %cst_121 = arith.constant dense<0.000000e+00> : vector<8x32xf32>
    %316 = tpu.matmul %314, %315, %cst_121 {dimension_numbers = #tpu.dot_dimension_numbers<[1], [0], [0], [1], [0, 0, 1, 1], [], []>} : vector<8x8xf32>, vector<8x32xf32>, vector<8x32xf32> -> vector<8x32xf32>
    %317 = arith.addf %296, %316 : vector<8x32xf32>
    %318 = vector.extract_strided_slice %254 {offsets = [0, 24], sizes = [8, 8], strides = [1, 1]} : vector<16x96xf32> to vector<8x8xf32>
    %cst_122 = arith.constant 0.353553385 : f32
    %319 = vector.broadcast %cst_122 : f32 to vector<8x8xf32>
    %320 = arith.mulf %318, %319 : vector<8x8xf32>
    %321 = vector.extract_strided_slice %254 {offsets = [0, 56], sizes = [8, 8], strides = [1, 1]} : vector<16x96xf32> to vector<8x8xf32>
    %322 = vector.extract_strided_slice %254 {offsets = [0, 88], sizes = [8, 8], strides = [1, 1]} : vector<16x96xf32> to vector<8x8xf32>
    %cst_123 = arith.constant dense<0.000000e+00> : vector<8x8xf32>
    %323 = tpu.matmul %320, %321, %cst_123 {dimension_numbers = #tpu.dot_dimension_numbers<[1], [1], [0], [0], [0, 0, 1, 0], [], []>} : vector<8x8xf32>, vector<8x8xf32>, vector<8x8xf32> -> vector<8x8xf32>
    %324 = arith.addf %323, %8 : vector<8x8xf32>
    %cst_124 = arith.constant dense<0xFF800000> : vector<8xf32>
    %325 = vector.multi_reduction <maximumf>, %324, %cst_124 [1] : vector<8x8xf32> to vector<8xf32>
    %326 = vector.shape_cast %325 : vector<8xf32> to vector<8x1xf32>
    %327 = vector.broadcast %326 : vector<8x1xf32> to vector<8x8xf32>
    %328 = arith.subf %324, %327 : vector<8x8xf32>
    %329 = math.exp %328 : vector<8x8xf32>
    %cst_125 = arith.constant dense<0.000000e+00> : vector<8xf32>
    %330 = vector.multi_reduction <add>, %329, %cst_125 [1] : vector<8x8xf32> to vector<8xf32>
    %331 = vector.shape_cast %330 : vector<8xf32> to vector<8x1xf32>
    %332 = tpu.reciprocal %331 {approx = true} : vector<8x1xf32> -> vector<8x1xf32>
    %333 = vector.broadcast %332 : vector<8x1xf32> to vector<8x8xf32>
    %334 = arith.mulf %329, %333 : vector<8x8xf32>
    %cst_126 = arith.constant dense<0.000000e+00> : vector<8x8xf32>
    %335 = tpu.matmul %334, %322, %cst_126 {dimension_numbers = #tpu.dot_dimension_numbers<[1], [0], [0], [1], [0, 0, 1, 1], [], []>} : vector<8x8xf32>, vector<8x8xf32>, vector<8x8xf32> -> vector<8x8xf32>
    %336 = vector.extract_strided_slice %255 {offsets = [24, 0], sizes = [8, 32], strides = [1, 1]} : vector<32x32xf32> to vector<8x32xf32>
    %cst_127 = arith.constant dense<0.000000e+00> : vector<8x32xf32>
    %337 = tpu.matmul %335, %336, %cst_127 {dimension_numbers = #tpu.dot_dimension_numbers<[1], [0], [0], [1], [0, 0, 1, 1], [], []>} : vector<8x8xf32>, vector<8x32xf32>, vector<8x32xf32> -> vector<8x32xf32>
    %338 = arith.addf %317, %337 : vector<8x32xf32>
    %c0_128 = arith.constant 0 : index
    %c0_129 = arith.constant 0 : index
    %339 = vector.load %arg20[%c0_128, %c0_129] : memref<1x32xf32, #tpu.memory_space<vmem>>, vector<1x32xf32>
    %340 = vector.broadcast %339 : vector<1x32xf32> to vector<8x32xf32>
    %341 = arith.addf %338, %340 : vector<8x32xf32>
    %342 = vector.extract_strided_slice %254 {offsets = [8, 0], sizes = [8, 8], strides = [1, 1]} : vector<16x96xf32> to vector<8x8xf32>
    %cst_130 = arith.constant 0.353553385 : f32
    %343 = vector.broadcast %cst_130 : f32 to vector<8x8xf32>
    %344 = arith.mulf %342, %343 : vector<8x8xf32>
    %345 = vector.extract_strided_slice %254 {offsets = [8, 32], sizes = [8, 8], strides = [1, 1]} : vector<16x96xf32> to vector<8x8xf32>
    %346 = vector.extract_strided_slice %254 {offsets = [8, 64], sizes = [8, 8], strides = [1, 1]} : vector<16x96xf32> to vector<8x8xf32>
    %cst_131 = arith.constant dense<0.000000e+00> : vector<8x8xf32>
    %347 = tpu.matmul %344, %345, %cst_131 {dimension_numbers = #tpu.dot_dimension_numbers<[1], [1], [0], [0], [0, 0, 1, 0], [], []>} : vector<8x8xf32>, vector<8x8xf32>, vector<8x8xf32> -> vector<8x8xf32>
    %348 = arith.addf %347, %8 : vector<8x8xf32>
    %cst_132 = arith.constant dense<0xFF800000> : vector<8xf32>
    %349 = vector.multi_reduction <maximumf>, %348, %cst_132 [1] : vector<8x8xf32> to vector<8xf32>
    %350 = vector.shape_cast %349 : vector<8xf32> to vector<8x1xf32>
    %351 = vector.broadcast %350 : vector<8x1xf32> to vector<8x8xf32>
    %352 = arith.subf %348, %351 : vector<8x8xf32>
    %353 = math.exp %352 : vector<8x8xf32>
    %cst_133 = arith.constant dense<0.000000e+00> : vector<8xf32>
    %354 = vector.multi_reduction <add>, %353, %cst_133 [1] : vector<8x8xf32> to vector<8xf32>
    %355 = vector.shape_cast %354 : vector<8xf32> to vector<8x1xf32>
    %356 = tpu.reciprocal %355 {approx = true} : vector<8x1xf32> -> vector<8x1xf32>
    %357 = vector.broadcast %356 : vector<8x1xf32> to vector<8x8xf32>
    %358 = arith.mulf %353, %357 : vector<8x8xf32>
    %cst_134 = arith.constant dense<0.000000e+00> : vector<8x8xf32>
    %359 = tpu.matmul %358, %346, %cst_134 {dimension_numbers = #tpu.dot_dimension_numbers<[1], [0], [0], [1], [0, 0, 1, 1], [], []>} : vector<8x8xf32>, vector<8x8xf32>, vector<8x8xf32> -> vector<8x8xf32>
    %360 = vector.extract_strided_slice %255 {offsets = [0, 0], sizes = [8, 32], strides = [1, 1]} : vector<32x32xf32> to vector<8x32xf32>
    %cst_135 = arith.constant dense<0.000000e+00> : vector<8x32xf32>
    %361 = tpu.matmul %359, %360, %cst_135 {dimension_numbers = #tpu.dot_dimension_numbers<[1], [0], [0], [1], [0, 0, 1, 1], [], []>} : vector<8x8xf32>, vector<8x32xf32>, vector<8x32xf32> -> vector<8x32xf32>
    %362 = vector.extract_strided_slice %254 {offsets = [8, 8], sizes = [8, 8], strides = [1, 1]} : vector<16x96xf32> to vector<8x8xf32>
    %cst_136 = arith.constant 0.353553385 : f32
    %363 = vector.broadcast %cst_136 : f32 to vector<8x8xf32>
    %364 = arith.mulf %362, %363 : vector<8x8xf32>
    %365 = vector.extract_strided_slice %254 {offsets = [8, 40], sizes = [8, 8], strides = [1, 1]} : vector<16x96xf32> to vector<8x8xf32>
    %366 = vector.extract_strided_slice %254 {offsets = [8, 72], sizes = [8, 8], strides = [1, 1]} : vector<16x96xf32> to vector<8x8xf32>
    %cst_137 = arith.constant dense<0.000000e+00> : vector<8x8xf32>
    %367 = tpu.matmul %364, %365, %cst_137 {dimension_numbers = #tpu.dot_dimension_numbers<[1], [1], [0], [0], [0, 0, 1, 0], [], []>} : vector<8x8xf32>, vector<8x8xf32>, vector<8x8xf32> -> vector<8x8xf32>
    %368 = arith.addf %367, %8 : vector<8x8xf32>
    %cst_138 = arith.constant dense<0xFF800000> : vector<8xf32>
    %369 = vector.multi_reduction <maximumf>, %368, %cst_138 [1] : vector<8x8xf32> to vector<8xf32>
    %370 = vector.shape_cast %369 : vector<8xf32> to vector<8x1xf32>
    %371 = vector.broadcast %370 : vector<8x1xf32> to vector<8x8xf32>
    %372 = arith.subf %368, %371 : vector<8x8xf32>
    %373 = math.exp %372 : vector<8x8xf32>
    %cst_139 = arith.constant dense<0.000000e+00> : vector<8xf32>
    %374 = vector.multi_reduction <add>, %373, %cst_139 [1] : vector<8x8xf32> to vector<8xf32>
    %375 = vector.shape_cast %374 : vector<8xf32> to vector<8x1xf32>
    %376 = tpu.reciprocal %375 {approx = true} : vector<8x1xf32> -> vector<8x1xf32>
    %377 = vector.broadcast %376 : vector<8x1xf32> to vector<8x8xf32>
    %378 = arith.mulf %373, %377 : vector<8x8xf32>
    %cst_140 = arith.constant dense<0.000000e+00> : vector<8x8xf32>
    %379 = tpu.matmul %378, %366, %cst_140 {dimension_numbers = #tpu.dot_dimension_numbers<[1], [0], [0], [1], [0, 0, 1, 1], [], []>} : vector<8x8xf32>, vector<8x8xf32>, vector<8x8xf32> -> vector<8x8xf32>
    %380 = vector.extract_strided_slice %255 {offsets = [8, 0], sizes = [8, 32], strides = [1, 1]} : vector<32x32xf32> to vector<8x32xf32>
    %cst_141 = arith.constant dense<0.000000e+00> : vector<8x32xf32>
    %381 = tpu.matmul %379, %380, %cst_141 {dimension_numbers = #tpu.dot_dimension_numbers<[1], [0], [0], [1], [0, 0, 1, 1], [], []>} : vector<8x8xf32>, vector<8x32xf32>, vector<8x32xf32> -> vector<8x32xf32>
    %382 = arith.addf %361, %381 : vector<8x32xf32>
    %383 = vector.extract_strided_slice %254 {offsets = [8, 16], sizes = [8, 8], strides = [1, 1]} : vector<16x96xf32> to vector<8x8xf32>
    %cst_142 = arith.constant 0.353553385 : f32
    %384 = vector.broadcast %cst_142 : f32 to vector<8x8xf32>
    %385 = arith.mulf %383, %384 : vector<8x8xf32>
    %386 = vector.extract_strided_slice %254 {offsets = [8, 48], sizes = [8, 8], strides = [1, 1]} : vector<16x96xf32> to vector<8x8xf32>
    %387 = vector.extract_strided_slice %254 {offsets = [8, 80], sizes = [8, 8], strides = [1, 1]} : vector<16x96xf32> to vector<8x8xf32>
    %cst_143 = arith.constant dense<0.000000e+00> : vector<8x8xf32>
    %388 = tpu.matmul %385, %386, %cst_143 {dimension_numbers = #tpu.dot_dimension_numbers<[1], [1], [0], [0], [0, 0, 1, 0], [], []>} : vector<8x8xf32>, vector<8x8xf32>, vector<8x8xf32> -> vector<8x8xf32>
    %389 = arith.addf %388, %8 : vector<8x8xf32>
    %cst_144 = arith.constant dense<0xFF800000> : vector<8xf32>
    %390 = vector.multi_reduction <maximumf>, %389, %cst_144 [1] : vector<8x8xf32> to vector<8xf32>
    %391 = vector.shape_cast %390 : vector<8xf32> to vector<8x1xf32>
    %392 = vector.broadcast %391 : vector<8x1xf32> to vector<8x8xf32>
    %393 = arith.subf %389, %392 : vector<8x8xf32>
    %394 = math.exp %393 : vector<8x8xf32>
    %cst_145 = arith.constant dense<0.000000e+00> : vector<8xf32>
    %395 = vector.multi_reduction <add>, %394, %cst_145 [1] : vector<8x8xf32> to vector<8xf32>
    %396 = vector.shape_cast %395 : vector<8xf32> to vector<8x1xf32>
    %397 = tpu.reciprocal %396 {approx = true} : vector<8x1xf32> -> vector<8x1xf32>
    %398 = vector.broadcast %397 : vector<8x1xf32> to vector<8x8xf32>
    %399 = arith.mulf %394, %398 : vector<8x8xf32>
    %cst_146 = arith.constant dense<0.000000e+00> : vector<8x8xf32>
    %400 = tpu.matmul %399, %387, %cst_146 {dimension_numbers = #tpu.dot_dimension_numbers<[1], [0], [0], [1], [0, 0, 1, 1], [], []>} : vector<8x8xf32>, vector<8x8xf32>, vector<8x8xf32> -> vector<8x8xf32>
    %401 = vector.extract_strided_slice %255 {offsets = [16, 0], sizes = [8, 32], strides = [1, 1]} : vector<32x32xf32> to vector<8x32xf32>
    %cst_147 = arith.constant dense<0.000000e+00> : vector<8x32xf32>
    %402 = tpu.matmul %400, %401, %cst_147 {dimension_numbers = #tpu.dot_dimension_numbers<[1], [0], [0], [1], [0, 0, 1, 1], [], []>} : vector<8x8xf32>, vector<8x32xf32>, vector<8x32xf32> -> vector<8x32xf32>
    %403 = arith.addf %382, %402 : vector<8x32xf32>
    %404 = vector.extract_strided_slice %254 {offsets = [8, 24], sizes = [8, 8], strides = [1, 1]} : vector<16x96xf32> to vector<8x8xf32>
    %cst_148 = arith.constant 0.353553385 : f32
    %405 = vector.broadcast %cst_148 : f32 to vector<8x8xf32>
    %406 = arith.mulf %404, %405 : vector<8x8xf32>
    %407 = vector.extract_strided_slice %254 {offsets = [8, 56], sizes = [8, 8], strides = [1, 1]} : vector<16x96xf32> to vector<8x8xf32>
    %408 = vector.extract_strided_slice %254 {offsets = [8, 88], sizes = [8, 8], strides = [1, 1]} : vector<16x96xf32> to vector<8x8xf32>
    %cst_149 = arith.constant dense<0.000000e+00> : vector<8x8xf32>
    %409 = tpu.matmul %406, %407, %cst_149 {dimension_numbers = #tpu.dot_dimension_numbers<[1], [1], [0], [0], [0, 0, 1, 0], [], []>} : vector<8x8xf32>, vector<8x8xf32>, vector<8x8xf32> -> vector<8x8xf32>
    %410 = arith.addf %409, %8 : vector<8x8xf32>
    %cst_150 = arith.constant dense<0xFF800000> : vector<8xf32>
    %411 = vector.multi_reduction <maximumf>, %410, %cst_150 [1] : vector<8x8xf32> to vector<8xf32>
    %412 = vector.shape_cast %411 : vector<8xf32> to vector<8x1xf32>
    %413 = vector.broadcast %412 : vector<8x1xf32> to vector<8x8xf32>
    %414 = arith.subf %410, %413 : vector<8x8xf32>
    %415 = math.exp %414 : vector<8x8xf32>
    %cst_151 = arith.constant dense<0.000000e+00> : vector<8xf32>
    %416 = vector.multi_reduction <add>, %415, %cst_151 [1] : vector<8x8xf32> to vector<8xf32>
    %417 = vector.shape_cast %416 : vector<8xf32> to vector<8x1xf32>
    %418 = tpu.reciprocal %417 {approx = true} : vector<8x1xf32> -> vector<8x1xf32>
    %419 = vector.broadcast %418 : vector<8x1xf32> to vector<8x8xf32>
    %420 = arith.mulf %415, %419 : vector<8x8xf32>
    %cst_152 = arith.constant dense<0.000000e+00> : vector<8x8xf32>
    %421 = tpu.matmul %420, %408, %cst_152 {dimension_numbers = #tpu.dot_dimension_numbers<[1], [0], [0], [1], [0, 0, 1, 1], [], []>} : vector<8x8xf32>, vector<8x8xf32>, vector<8x8xf32> -> vector<8x8xf32>
    %422 = vector.extract_strided_slice %255 {offsets = [24, 0], sizes = [8, 32], strides = [1, 1]} : vector<32x32xf32> to vector<8x32xf32>
    %cst_153 = arith.constant dense<0.000000e+00> : vector<8x32xf32>
    %423 = tpu.matmul %421, %422, %cst_153 {dimension_numbers = #tpu.dot_dimension_numbers<[1], [0], [0], [1], [0, 0, 1, 1], [], []>} : vector<8x8xf32>, vector<8x32xf32>, vector<8x32xf32> -> vector<8x32xf32>
    %424 = arith.addf %403, %423 : vector<8x32xf32>
    %c0_154 = arith.constant 0 : index
    %c0_155 = arith.constant 0 : index
    %425 = vector.load %arg20[%c0_154, %c0_155] : memref<1x32xf32, #tpu.memory_space<vmem>>, vector<1x32xf32>
    %426 = vector.broadcast %425 : vector<1x32xf32> to vector<8x32xf32>
    %427 = arith.addf %424, %426 : vector<8x32xf32>
    %428 = tpu.concatenate %341, %427 in 0 : vector<8x32xf32>, vector<8x32xf32> -> vector<16x32xf32>
    %429 = arith.addf %249, %428 : vector<16x32xf32>
    %c0_156 = arith.constant 0 : index
    %c0_157 = arith.constant 0 : index
    %430 = vector.load %arg21[%c0_156, %c0_157] : memref<1x32xf32, #tpu.memory_space<vmem>>, vector<1x32xf32>
    %c0_158 = arith.constant 0 : index
    %c0_159 = arith.constant 0 : index
    %431 = vector.load %arg22[%c0_158, %c0_159] : memref<1x32xf32, #tpu.memory_space<vmem>>, vector<1x32xf32>
    %cst_160 = arith.constant dense<0.000000e+00> : vector<16xf32>
    %432 = vector.multi_reduction <add>, %429, %cst_160 [1] : vector<16x32xf32> to vector<16xf32>
    %433 = vector.shape_cast %432 : vector<16xf32> to vector<16x1xf32>
    %cst_161 = arith.constant 3.200000e+01 : f32
    %434 = vector.broadcast %cst_161 : f32 to vector<16x1xf32>
    %435 = arith.divf %433, %434 : vector<16x1xf32>
    %436 = vector.broadcast %435 : vector<16x1xf32> to vector<16x32xf32>
    %437 = arith.subf %429, %436 : vector<16x32xf32>
    %438 = arith.mulf %437, %437 : vector<16x32xf32>
    %cst_162 = arith.constant dense<0.000000e+00> : vector<16xf32>
    %439 = vector.multi_reduction <add>, %438, %cst_162 [1] : vector<16x32xf32> to vector<16xf32>
    %440 = vector.shape_cast %439 : vector<16xf32> to vector<16x1xf32>
    %cst_163 = arith.constant 3.200000e+01 : f32
    %441 = vector.broadcast %cst_163 : f32 to vector<16x1xf32>
    %442 = arith.divf %440, %441 : vector<16x1xf32>
    %443 = vector.broadcast %435 : vector<16x1xf32> to vector<16x32xf32>
    %444 = arith.subf %429, %443 : vector<16x32xf32>
    %cst_164 = arith.constant 9.99999974E-6 : f32
    %445 = vector.broadcast %cst_164 : f32 to vector<16x1xf32>
    %446 = arith.addf %442, %445 : vector<16x1xf32>
    %447 = math.rsqrt %446 : vector<16x1xf32>
    %448 = vector.broadcast %447 : vector<16x1xf32> to vector<16x32xf32>
    %449 = arith.mulf %444, %448 : vector<16x32xf32>
    %450 = vector.broadcast %430 : vector<1x32xf32> to vector<16x32xf32>
    %451 = arith.mulf %449, %450 : vector<16x32xf32>
    %452 = vector.broadcast %431 : vector<1x32xf32> to vector<16x32xf32>
    %453 = arith.addf %451, %452 : vector<16x32xf32>
    %c0_165 = arith.constant 0 : index
    %c0_166 = arith.constant 0 : index
    %454 = vector.load %arg23[%c0_165, %c0_166] : memref<32x64xf32, #tpu.memory_space<vmem>>, vector<32x64xf32>
    %cst_167 = arith.constant dense<0.000000e+00> : vector<16x64xf32>
    %455 = tpu.matmul %453, %454, %cst_167 {dimension_numbers = #tpu.dot_dimension_numbers<[1], [0], [0], [1], [0, 0, 1, 1], [], []>} : vector<16x32xf32>, vector<32x64xf32>, vector<16x64xf32> -> vector<16x64xf32>
    %c0_168 = arith.constant 0 : index
    %c0_169 = arith.constant 0 : index
    %456 = vector.load %arg24[%c0_168, %c0_169] : memref<1x64xf32, #tpu.memory_space<vmem>>, vector<1x64xf32>
    %457 = vector.broadcast %456 : vector<1x64xf32> to vector<16x64xf32>
    %458 = arith.addf %455, %457 : vector<16x64xf32>
    %cst_170 = arith.constant 0.000000e+00 : f32
    %459 = vector.broadcast %cst_170 : f32 to vector<16x64xf32>
    %460 = arith.maximumf %458, %459 : vector<16x64xf32>
    %c0_171 = arith.constant 0 : index
    %c0_172 = arith.constant 0 : index
    %461 = vector.load %arg25[%c0_171, %c0_172] : memref<64x32xf32, #tpu.memory_space<vmem>>, vector<64x32xf32>
    %cst_173 = arith.constant dense<0.000000e+00> : vector<16x32xf32>
    %462 = tpu.matmul %460, %461, %cst_173 {dimension_numbers = #tpu.dot_dimension_numbers<[1], [0], [0], [1], [0, 0, 1, 1], [], []>} : vector<16x64xf32>, vector<64x32xf32>, vector<16x32xf32> -> vector<16x32xf32>
    %c0_174 = arith.constant 0 : index
    %c0_175 = arith.constant 0 : index
    %463 = vector.load %arg26[%c0_174, %c0_175] : memref<1x32xf32, #tpu.memory_space<vmem>>, vector<1x32xf32>
    %464 = vector.broadcast %463 : vector<1x32xf32> to vector<16x32xf32>
    %465 = arith.addf %462, %464 : vector<16x32xf32>
    %466 = arith.addf %453, %465 : vector<16x32xf32>
    %c0_176 = arith.constant 0 : index
    %c0_177 = arith.constant 0 : index
    %467 = vector.load %arg27[%c0_176, %c0_177] : memref<1x32xf32, #tpu.memory_space<vmem>>, vector<1x32xf32>
    %c0_178 = arith.constant 0 : index
    %c0_179 = arith.constant 0 : index
    %468 = vector.load %arg28[%c0_178, %c0_179] : memref<1x32xf32, #tpu.memory_space<vmem>>, vector<1x32xf32>
    %cst_180 = arith.constant dense<0.000000e+00> : vector<16xf32>
    %469 = vector.multi_reduction <add>, %466, %cst_180 [1] : vector<16x32xf32> to vector<16xf32>
    %470 = vector.shape_cast %469 : vector<16xf32> to vector<16x1xf32>
    %cst_181 = arith.constant 3.200000e+01 : f32
    %471 = vector.broadcast %cst_181 : f32 to vector<16x1xf32>
    %472 = arith.divf %470, %471 : vector<16x1xf32>
    %473 = vector.broadcast %472 : vector<16x1xf32> to vector<16x32xf32>
    %474 = arith.subf %466, %473 : vector<16x32xf32>
    %475 = arith.mulf %474, %474 : vector<16x32xf32>
    %cst_182 = arith.constant dense<0.000000e+00> : vector<16xf32>
    %476 = vector.multi_reduction <add>, %475, %cst_182 [1] : vector<16x32xf32> to vector<16xf32>
    %477 = vector.shape_cast %476 : vector<16xf32> to vector<16x1xf32>
    %cst_183 = arith.constant 3.200000e+01 : f32
    %478 = vector.broadcast %cst_183 : f32 to vector<16x1xf32>
    %479 = arith.divf %477, %478 : vector<16x1xf32>
    %480 = vector.broadcast %472 : vector<16x1xf32> to vector<16x32xf32>
    %481 = arith.subf %466, %480 : vector<16x32xf32>
    %cst_184 = arith.constant 9.99999974E-6 : f32
    %482 = vector.broadcast %cst_184 : f32 to vector<16x1xf32>
    %483 = arith.addf %479, %482 : vector<16x1xf32>
    %484 = math.rsqrt %483 : vector<16x1xf32>
    %485 = vector.broadcast %484 : vector<16x1xf32> to vector<16x32xf32>
    %486 = arith.mulf %481, %485 : vector<16x32xf32>
    %487 = vector.broadcast %467 : vector<1x32xf32> to vector<16x32xf32>
    %488 = arith.mulf %486, %487 : vector<16x32xf32>
    %489 = vector.broadcast %468 : vector<1x32xf32> to vector<16x32xf32>
    %490 = arith.addf %488, %489 : vector<16x32xf32>
    %491 = vector.extract_strided_slice %490 {offsets = [0, 0], sizes = [8, 32], strides = [1, 1]} : vector<16x32xf32> to vector<8x32xf32>
    %cst_185 = arith.constant dense<0.000000e+00> : vector<32xf32>
    %492 = vector.multi_reduction <add>, %491, %cst_185 [0] : vector<8x32xf32> to vector<32xf32>
    %493 = vector.shape_cast %492 : vector<32xf32> to vector<1x32xf32>
    %cst_186 = arith.constant 8.000000e+00 : f32
    %494 = vector.broadcast %cst_186 : f32 to vector<1x32xf32>
    %495 = arith.divf %493, %494 : vector<1x32xf32>
    %496 = vector.extract_strided_slice %490 {offsets = [8, 0], sizes = [8, 32], strides = [1, 1]} : vector<16x32xf32> to vector<8x32xf32>
    %cst_187 = arith.constant dense<0.000000e+00> : vector<32xf32>
    %497 = vector.multi_reduction <add>, %496, %cst_187 [0] : vector<8x32xf32> to vector<32xf32>
    %498 = vector.shape_cast %497 : vector<32xf32> to vector<1x32xf32>
    %cst_188 = arith.constant 8.000000e+00 : f32
    %499 = vector.broadcast %cst_188 : f32 to vector<1x32xf32>
    %500 = arith.divf %498, %499 : vector<1x32xf32>
    %501 = tpu.concatenate %495, %500 in 0 : vector<1x32xf32>, vector<1x32xf32> -> vector<2x32xf32>
    %c0_189 = arith.constant 0 : index
    %c0_190 = arith.constant 0 : index
    %502 = vector.load %arg29[%c0_189, %c0_190] : memref<32x128xf32, #tpu.memory_space<vmem>>, vector<32x128xf32>
    %cst_191 = arith.constant dense<0.000000e+00> : vector<2x128xf32>
    %503 = tpu.matmul %501, %502, %cst_191 {dimension_numbers = #tpu.dot_dimension_numbers<[1], [0], [0], [1], [0, 0, 1, 1], [], []>} : vector<2x32xf32>, vector<32x128xf32>, vector<2x128xf32> -> vector<2x128xf32>
    %c0_192 = arith.constant 0 : index
    %c0_193 = arith.constant 0 : index
    %504 = vector.load %arg30[%c0_192, %c0_193] : memref<1x128xf32, #tpu.memory_space<vmem>>, vector<1x128xf32>
    %505 = vector.broadcast %504 : vector<1x128xf32> to vector<2x128xf32>
    %506 = arith.addf %503, %505 : vector<2x128xf32>
    %cst_194 = arith.constant 0.000000e+00 : f32
    %507 = vector.broadcast %cst_194 : f32 to vector<2x128xf32>
    %508 = arith.maximumf %506, %507 : vector<2x128xf32>
    %c0_195 = arith.constant 0 : index
    %c0_196 = arith.constant 0 : index
    %509 = vector.load %arg31[%c0_195, %c0_196] : memref<128x64xf32, #tpu.memory_space<vmem>>, vector<128x64xf32>
    %cst_197 = arith.constant dense<0.000000e+00> : vector<2x64xf32>
    %510 = tpu.matmul %508, %509, %cst_197 {dimension_numbers = #tpu.dot_dimension_numbers<[1], [0], [0], [1], [0, 0, 1, 1], [], []>} : vector<2x128xf32>, vector<128x64xf32>, vector<2x64xf32> -> vector<2x64xf32>
    %c0_198 = arith.constant 0 : index
    %c0_199 = arith.constant 0 : index
    %511 = vector.load %arg32[%c0_198, %c0_199] : memref<1x64xf32, #tpu.memory_space<vmem>>, vector<1x64xf32>
    %512 = vector.broadcast %511 : vector<1x64xf32> to vector<2x64xf32>
    %513 = arith.addf %510, %512 : vector<2x64xf32>
    %cst_200 = arith.constant 0.000000e+00 : f32
    %514 = vector.broadcast %cst_200 : f32 to vector<2x64xf32>
    %515 = arith.maximumf %513, %514 : vector<2x64xf32>
    %c0_201 = arith.constant 0 : index
    %c0_202 = arith.constant 0 : index
    %516 = vector.load %arg33[%c0_201, %c0_202] : memref<64x1xf32, #tpu.memory_space<vmem>>, vector<64x1xf32>
    %cst_203 = arith.constant dense<0.000000e+00> : vector<2x1xf32>
    %517 = tpu.matmul %515, %516, %cst_203 {dimension_numbers = #tpu.dot_dimension_numbers<[1], [0], [0], [1], [0, 0, 1, 1], [], []>} : vector<2x64xf32>, vector<64x1xf32>, vector<2x1xf32> -> vector<2x1xf32>
    %c0_204 = arith.constant 0 : index
    %c0_205 = arith.constant 0 : index
    %518 = vector.load %arg34[%c0_204, %c0_205] : memref<1x1xf32, #tpu.memory_space<vmem>>, vector<1x1xf32>
    %519 = vector.broadcast %518 : vector<1x1xf32> to vector<2x1xf32>
    %520 = arith.addf %517, %519 : vector<2x1xf32>
    %521 = arith.negf %520 : vector<2x1xf32>
    %522 = math.exp %521 : vector<2x1xf32>
    %cst_206 = arith.constant 1.000000e+00 : f32
    %523 = vector.broadcast %cst_206 : f32 to vector<2x1xf32>
    %524 = arith.addf %523, %522 : vector<2x1xf32>
    %525 = arith.divf %523, %524 : vector<2x1xf32>
    %c0_207 = arith.constant 0 : index
    %c0_208 = arith.constant 0 : index
    %526 = vector.load %arg35[%c0_207, %c0_208] : memref<2x1xf32, #tpu.memory_space<vmem>>, vector<2x1xf32>
    tpu.vector_store %arg35[%c0_207, %c0_208], %525 {strides = array<i32>} : memref<2x1xf32, #tpu.memory_space<vmem>>, vector<2x1xf32>,
    return
  }
}

</mosaic_0001>

<bundles_post_ra>
// kernel: transformer_forward.1
= control target key start
LH: loop header
LB: loop body
LE: loop exit
PB: predicated region body
PF: predicated region fallthrough
CT: control target
= control target key end

     0   :  { %s5981_s3 = smov 3   ;;  %vm165_vm0 = vcmask 1042432   ;;  %vm158_vm1 = vcmask 23552   ;;  %s5982_s10 = smov 5   ;;  %vm260_vm2 = vcmask 261120   ;;  %v5985_v16 = vmov 0.0   ;;  %s6689_s0 = inlined_call_operand.smem [shape: u32[36], index: -1, kind: input, shape index: {}] }
   0x1   :  { %s5147_s6 = sld [smem:[%s6689_s0 + %s5981_s3]]   ;;  %s5983_s14 = smov 4   ;;  %5482 = vmatprep.subr.mxu1 %v5985_v16  ;;  %vm5987_vm3 = vmmov 0   ;;  %vm350_vm4 = vcmask 64512   ;;  %vm2422_vm5 = vcmask 523264   ;;  %vm4864_vm6 = vcmask 1040384  }
   0x2   :  { %s1_s9 = sld [smem:[%s6689_s0]]   ;;  %s5984_s18 = smov 1   ;;  %5484 = vmatprep.mubr.msk.f32.mxu1 %vm5987_vm3, %v5985_v16  ;;  %vm5139_vm7 = vcmask 1024  }
   0x3   :  { %s5149_s13 = sld [smem:[%s6689_s0 + %s5982_s10]]   ;;  %s5986_s22 = smov 6  }
   0x4   :  { %s5148_s17 = sld [smem:[%s6689_s0 + %s5983_s14]]   ;;  %s5988_s26 = smov 96  }
   0x5   :  { %s5145_s21 = sld [smem:[%s6689_s0 + %s5984_s18]]   ;;  %s5989_s27 = smov 120  }
   0x6   :  { %s5150_s25 = sld [smem:[%s6689_s0 + %s5986_s22]]   ;;  %s5990_s28 = smov 88  }
   0x7   :  { %v150_v0 = vld [vmem:[%s5147_s6] sm:$0x7]  ;;  %s5991_s29 = smov 2   ;;  %s5992_s3 = smov 56  }
   0x8   :  { %5456 = vmatprep.subr.msk.mxu0 %vm165_vm0, %v150_v0  ;;  %v148_v1 = vld [vmem:[%s1_s9] sm:$0xff]  ;;  %v149_v2 = vld [vmem:[%s1_s9 + $0x8] sm:$0xff]  ;;  %s6093_s2 = sld [smem:[%s6689_s0 + %s5991_s29]]   ;;  %s5993_s4 = smov 64  }
   0x9   :  { %5457 = vmatpush3.msk.msra.mxu0 %vm165_vm0, %v150_v0  ;;  %5458 = vmatprep.mubr.msk.f32.mxu0 %vm158_vm1, %v148_v1  ;;  %v252_v3 = vld [vmem:[%s5149_s13 + $0x18] sm:$0xff]  ;;  %v251_v4 = vld [vmem:[%s5149_s13 + $0x10] sm:$0xff]  ;;  %v250_v5 = vld [vmem:[%s5149_s13 + $0x8] sm:$0xff]  ;;  %s5994_s5 = smov 80   ;;  %s5995_s6 = smov 112  }
   0xa   :  { %5459 = vmatmul.mubr.msk.f32.vlgmr.msra.gmra.mxu0 %vm158_vm1, %v149_v2  ;;  %5461 = vmatprep.subr.mxu0 %v252_v3  ;;  %v249_v6 = vld [vmem:[%s5149_s13] sm:$0xff]  ;;  %s5996_s7 = smov 7   ;;  %s5997_s11 = smov 72  }
   0xb   :  { %5462 = vmatpush3.msra.mxu0 %v252_v3  ;;  %v5180_v7 = vld [vmem:[%s5148_s17] ss:$0 sm:$0xff]  ;;  %v245_v12 = vld [vmem:[%s5145_s21 + $0x8] sm:$0xff]  ;;  %s6123_s10 = sld [smem:[%s6689_s0 + %s5996_s7]]   ;;  %s5998_s12 = smov 104  }
   0xc   :  { %5463 = vmatprep.subr.mxu0 %v251_v4  ;;  %v244_v11 = vld [vmem:[%s5145_s21] sm:$0xff]  ;;  %s5999_s13 = smov 48   ;;  %s6000_s14 = smov 40  }
   0xd   :  { %5464 = vmatpush3.msra.mxu0 %v251_v4  ;;  %v5184_v17 = vld [vmem:[%s5150_s25] ss:$0 sm:$0xff]  ;;  %s6001_s15 = smov 8   ;;  %s6002_s19 = smov 9  }
   0xe   :  { %5465 = vmatprep.subr.mxu0 %v250_v5  ;;  %v6096_v26 = vld [vmem:[%s6093_s2] sm:$0xff]  ;;  %s5152_s18 = sld [smem:[%s6689_s0 + %s6001_s15]]   ;;  %s6003_s23 = smov 10  }
   0xf   :  { %5466 = vmatpush3.msra.mxu0 %v250_v5  ;;  %s5153_s22 = sld [smem:[%s6689_s0 + %s6002_s19]]   ;;  %s6004_s30 = smov 11  }
  0x10   :  { %5467 = vmatprep.subr.mxu0 %v249_v6  ;;  %s5154_s29 = sld [smem:[%s6689_s0 + %s6003_s23]]   ;;  %s6005_s9 = smov 13  }
  0x11   :  { %5468 = vmatpush3.msra.mxu0 %v249_v6  ;;  %v6126_v53 = vld [vmem:[%s6123_s10] sm:$0xff]  ;;  %v6130_v54 = vld [vmem:[%s6123_s10 + $0x8] sm:$0xff]  ;;  %s5155_s8 = sld [smem:[%s6689_s0 + %s6004_s30]]   ;;  %s6006_s17 = smov 12  }
  0x12   :  { %5472 = vmatprep.subr.mxu0 %v5985_v16  ;;  %s5157_s16 = sld [smem:[%s6689_s0 + %s6005_s9]]   ;;  %s6007_s21 = smov 14  }
  0x13   :  { %s5156_s20 = sld [smem:[%s6689_s0 + %s6006_s17]]   ;;  %s6008_s25 = smov 17  }
  0x14   :  { %s5158_s24 = sld [smem:[%s6689_s0 + %s6007_s21]]   ;;  %s6009_s7 = smov 15  }
  0x15   :  { %s5161_s1 = sld [smem:[%s6689_s0 + %s6008_s25]]   ;;  %s6010_s15 = smov 16  }
  0x16   :  { %s6011_s19 = smov 18   ;;  %s6012_s23 = smov 19  }
  0x17   :  { %s6016_s30 = smov 23   ;;  %s6017_s9 = smov 25  }
  0x18   :  { %s6018_s17 = smov 24   ;;  %s6019_s21 = smov 26  }
  0x19   :  { %s6020_s25 = smov 29  }
  0xca   :  { %v5460_v8 = vpop.f32.mrf.mxu0 }
  0xcb   :  { %v241_v9 = vadd.f32 %v5460_v8, %v5180_v7 }
  0xcc   :  { %v235_v10 = vpop.f32.mrf.mxu0 }
  0xcd   :  { %v236_v13 = vadd.f32 %v5180_v7, %v235_v10  ;;  %v6051_v15 = vadd.f32 %v245_v12, %v241_v9 }
  0xcf   :  { %v6049_v14 = vadd.f32 %v244_v11, %v236_v13 }
  0xd1   :  { %5469 = vmatprep.mubr.msk.f32.mxu0 %vm260_vm2, %v6049_v14 }
  0xd2   :  { %5470 = vmatmul.mubr.msk.f32.vlgmr.msra.gmra.mxu0 %vm260_vm2, %v6051_v15 }
  0xd3   :  { %5474 = vmatprep.mubr.msk.f32.mxu0 %vm5987_vm3, %v5985_v16 }
 0x192   :  { %v5471_v18 = vpop.f32.mrf.mxu0 }
 0x193   :  { %v6066_v19 = vadd.f32 %v5471_v18, %v5184_v17 }
 0x194   :  { %v333_v20 = vpop.f32.mrf.mxu0 }
 0x195   :  { %v6068_v21 = vadd.f32 %v5184_v17, %v333_v20 }
 0x197   :  { %348 = vrot.lane.b32.xlu0 %v6068_v21, %s5988_s26  ;;  %v6073_v22 = vmul.f32 0.35355338, %v6068_v21 }
 0x199   :  { %513 = vrot.lane.b32.xlu1 %v6073_v22, %s5989_s27 }
 0x19b   :  { %515 = vrot.lane.b32.xlu0 %v6068_v21, %s5990_s28 }
 0x209   :  { %v349_v23 = vpop.permute.xlu0 %348 }
 0x20a   :  { %5473 = vmatpush3.xpose.msk.msra.mxu0 %vm350_vm4, %v349_v23 }
 0x20b   :  { %5477 = vmatprep.subr.mxu0 %v5985_v16  ;;  %v514_v25 = vpop.permute.xlu1 %513 }
 0x20d   :  { %v516_v24 = vpop.permute.xlu0 %515  ;;  %5475 = vmatmul.mubr.msk.f32.vlgmr.msra.gmra.mxu0 %vm350_vm4, %v6073_v22 }
 0x20e   :  { %5483 = vmatpush3.xpose.msk.msra.mxu1 %vm350_vm4, %v516_v24  ;;  %5479 = vmatprep.mubr.msk.f32.mxu0 %vm5987_vm3, %v5985_v16 }
 0x20f   :  { %5492 = vmatprep.subr.mxu1 %v5985_v16 }
 0x211   :  { %5485 = vmatmul.mubr.msk.f32.vlgmr.msra.gmra.mxu1 %vm350_vm4, %v514_v25 }
 0x212   :  { %5494 = vmatprep.mubr.msk.f32.mxu1 %vm5987_vm3, %v5985_v16  ;;  %5493 = vmatpush3.msra.mxu1 %v6130_v54 }
 0x213   :  { %5502 = vmatprep.subr.mxu1 %v5985_v16 }
 0x2cd   :  { %v422_v27 = vpop.f32.mrf.mxu0 }
 0x2ce   :  { %v423_v28 = vadd.f32 %v422_v27, %v6096_v26 }
 0x2cf   :  { %v5476_v29 = vpop.f32.mrf.mxu0 }
 0x2d0   :  { %v426_v30 = vsel %vm350_vm4, %v423_v28, -inf }
 0x2d1   :  { %v587_v31 = vpop.f32.mrf.mxu1  ;;  %427 = vmax.xlane.f32.xlu1 %v426_v30 }
 0x2d2   :  { %v588_v32 = vadd.f32 %v587_v31, %v6096_v26 }
 0x2d3   :  { %v5486_v33 = vpop.f32.mrf.mxu1 }
 0x2d4   :  { %v591_v34 = vsel %vm350_vm4, %v588_v32, -inf }
 0x2d5   :  { %592 = vmax.xlane.f32.xlu0 %v591_v34 }
 0x35a   :  { %v428_v35 = vpop.xlane.xlu1 %427 }
 0x35b   :  { %v429_v36 = vsub.f32 %v423_v28, %v428_v35 }
 0x35d   :  { %v430_v37 = vmul.f32 1.442695, %v429_v36  ;;  %v6185_v36 = vmul.f32 0.35355338, %v6066_v19 }
 0x35e   :  { %v593_v38 = vpop.xlane.xlu0 %592 }
 0x35f   :  { %5896 = vpow2.f32 %v430_v37  ;;  %v594_v39 = vsub.f32 %v588_v32, %v593_v38 }
 0x361   :  { %v595_v40 = vmul.f32 1.442695, %v594_v39 }
 0x363   :  { %5898 = vpow2.f32 %v595_v40 }
 0x36c   :  { %v5897_v41 = vpop.eup %5896 }
 0x36d   :  { %v432_v42 = vsel %vm350_vm4, %v5897_v41, 0.0 }
 0x36e   :  { %433 = vadd.xlane.f32.xlu0 %v432_v42 }
 0x370   :  { %v5899_v43 = vpop.eup %5898 }
 0x371   :  { %v597_v44 = vsel %vm350_vm4, %v5899_v43, 0.0 }
 0x372   :  { %598 = vadd.xlane.f32.xlu1 %v597_v44 }
 0x383   :  { %602 = vrot.lane.b32.xlu1 %v6068_v21, %s5992_s3 }
 0x384   :  { %437 = vrot.lane.b32.xlu0 %v6068_v21, %s5993_s4 }
 0x387   :  { %826 = vrot.lane.b32.xlu1 %v6068_v21, %s5994_s5 }
 0x388   :  { %824 = vrot.lane.b32.xlu0 %v6073_v22, %s5995_s6 }
 0x3f7   :  { %v434_v45 = vpop.xlane.xlu0 %433 }
 0x3f8   :  { %5900 = vrcp.f32 %v434_v45  ;;  %v6207_v45 = vld [vmem:[%s6123_s10 + $0x18] sm:$0xff] }
 0x3fb   :  { %v438_v46 = vpop.permute.xlu0 %437  ;;  %v599_v47 = vpop.xlane.xlu1 %598 }
 0x3fc   :  { %5902 = vrcp.f32 %v599_v47  ;;  %5478 = vmatpush3.msra.mxu0 %v438_v46 }
 0x3fd   :  { %5487 = vmatprep.subr.mxu0 %v5985_v16 }
 0x3ff   :  { %v603_v50 = vpop.permute.xlu1 %602  ;;  %v825_v60 = vpop.permute.xlu0 %824 }
 0x403   :  { %v827_v58 = vpop.permute.xlu1 %826 }
 0x405   :  { %v5901_v48 = vpop.eup %5900 }
 0x406   :  { %v436_v49 = vmul.f32 %v5901_v48, %v5897_v41 }
 0x408   :  { %5480 = vmatmul.mubr.msk.f32.vlgmr.msra.gmra.mxu0 %vm350_vm4, %v436_v49 }
 0x409   :  { %v5903_v51 = vpop.eup %5902  ;;  %5488 = vmatpush3.msra.mxu0 %v603_v50  ;;  %5489 = vmatprep.mubr.msk.f32.mxu0 %vm5987_vm3, %v5985_v16 }
 0x40a   :  { %v601_v52 = vmul.f32 %v5903_v51, %v5899_v43  ;;  %5497 = vmatprep.subr.mxu0 %v5985_v16 }
 0x40c   :  { %5490 = vmatmul.mubr.msk.f32.vlgmr.msra.gmra.mxu0 %vm350_vm4, %v601_v52 }
 0x40d   :  { %5499 = vmatprep.mubr.msk.f32.mxu0 %vm5987_vm3, %v5985_v16  ;;  %5498 = vmatpush3.msra.mxu0 %v6126_v53 }
 0x40e   :  { %5507 = vmatprep.subr.mxu0 %v5985_v16 }
 0x4c8   :  { %v509_v55 = vpop.f32.mrf.mxu0 }
 0x4c9   :  { %5500 = vmatmul.mubr.msk.f32.vlgmr.msra.gmra.mxu0 %vm350_vm4, %v509_v55 }
 0x4ca   :  { %v5481_v56 = vpop.f32.mrf.mxu0  ;;  %5509 = vmatprep.mubr.msk.f32.mxu0 %vm5987_vm3, %v5985_v16 }
 0x4cc   :  { %v674_v57 = vpop.f32.mrf.mxu0 }
 0x4cd   :  { %5495 = vmatmul.mubr.msk.f32.vlgmr.msra.gmra.mxu1 %vm350_vm4, %v674_v57 }
 0x4ce   :  { %5503 = vmatpush3.xpose.msk.msra.mxu1 %vm350_vm4, %v827_v58  ;;  %v5491_v59 = vpop.f32.mrf.mxu0  ;;  %5504 = vmatprep.mubr.msk.f32.mxu1 %vm5987_vm3, %v5985_v16 }
 0x4cf   :  { %5512 = vmatprep.subr.mxu1 %v5985_v16 }
 0x4d1   :  { %5505 = vmatmul.mubr.msk.f32.vlgmr.msra.gmra.mxu1 %vm350_vm4, %v825_v60 }
 0x4d2   :  { %5514 = vmatprep.mubr.msk.f32.mxu1 %vm5987_vm3, %v5985_v16 }
 0x589   :  { %v820_v61 = vpop.f32.mrf.mxu0 }
 0x58b   :  { %v5501_v62 = vpop.f32.mrf.mxu0 }
 0x58d   :  { %v747_v63 = vpop.f32.mrf.mxu1 }
 0x58e   :  { %v6146_v0 = vadd.f32 %v820_v61, %v747_v63 }
 0x58f   :  { %v5496_v1 = vpop.f32.mrf.mxu1 }
 0x591   :  { %v898_v2 = vpop.f32.mrf.mxu1 }
 0x592   :  { %v899_v3 = vadd.f32 %v898_v2, %v6096_v26 }
 0x593   :  { %v5506_v4 = vpop.f32.mrf.mxu1 }
 0x594   :  { %v902_v5 = vsel %vm350_vm4, %v899_v3, -inf }
 0x595   :  { %903 = vmax.xlane.f32.xlu1 %v902_v5 }
 0x5a6   :  { %1065 = vrot.lane.b32.xlu1 %v6068_v21, %s5997_s11 }
 0x5aa   :  { %1063 = vrot.lane.b32.xlu1 %v6073_v22, %s5998_s12  ;;  %v6169_v22 = vld [vmem:[%s6123_s10 + $0x10] sm:$0xff]  ;;  %s5159_s10 = sld [smem:[%s6689_s0 + %s6009_s7]]   ;;  %s6024_s7 = smov 33  }
 0x5ab   :  { %5513 = vmatpush3.msra.mxu1 %v6169_v22 }
 0x5ac   :  { %5522 = vmatprep.subr.mxu1 %v5985_v16 }
 0x5ae   :  { %1312 = vrot.lane.b32.xlu1 %v6066_v19, %s5988_s26 }
 0x61e   :  { %v904_v6 = vpop.xlane.xlu1 %903 }
 0x61f   :  { %v905_v7 = vsub.f32 %v899_v3, %v904_v6 }
 0x621   :  { %v906_v8 = vmul.f32 1.442695, %v905_v7 }
 0x622   :  { %v1066_v17 = vpop.permute.xlu1 %1065 }
 0x623   :  { %5904 = vpow2.f32 %v906_v8 }
 0x626   :  { %v1064_v20 = vpop.permute.xlu1 %1063 }
 0x62a   :  { %v1313_v39 = vpop.permute.xlu1 %1312 }
 0x630   :  { %v5905_v9 = vpop.eup %5904 }
 0x631   :  { %v908_v10 = vsel %vm350_vm4, %v5905_v9, 0.0 }
 0x632   :  { %909 = vadd.xlane.f32.xlu0 %v908_v10 }
 0x648   :  { %913 = vrot.lane.b32.xlu0 %v6068_v21, %s5999_s13 }
 0x6bb   :  { %v910_v11 = vpop.xlane.xlu0 %909 }
 0x6bc   :  { %5906 = vrcp.f32 %v910_v11 }
 0x6bf   :  { %v914_v12 = vpop.permute.xlu0 %913 }
 0x6c0   :  { %5508 = vmatpush3.msra.mxu0 %v914_v12 }
 0x6c1   :  { %5517 = vmatprep.subr.mxu0 %v5985_v16 }
 0x6c9   :  { %v5907_v13 = vpop.eup %5906 }
 0x6ca   :  { %v912_v18 = vmul.f32 %v5907_v13, %v5905_v9 }
 0x6cc   :  { %5510 = vmatmul.mubr.msk.f32.vlgmr.msra.gmra.mxu0 %vm350_vm4, %v912_v18 }
 0x6cd   :  { %5518 = vmatpush3.xpose.msk.msra.mxu0 %vm350_vm4, %v1066_v17  ;;  %5519 = vmatprep.mubr.msk.f32.mxu0 %vm5987_vm3, %v5985_v16 }
 0x6ce   :  { %5527 = vmatprep.subr.mxu0 %v5985_v16 }
 0x6d0   :  { %5520 = vmatmul.mubr.msk.f32.vlgmr.msra.gmra.mxu0 %vm350_vm4, %v1064_v20 }
 0x6d1   :  { %5529 = vmatprep.mubr.msk.f32.mxu0 %vm5987_vm3, %v5985_v16  ;;  %5528 = vmatpush3.msra.mxu0 %v6207_v45 }
 0x6d2   :  { %5537 = vmatprep.subr.mxu0 %v5985_v16 }
 0x78c   :  { %v985_v23 = vpop.f32.mrf.mxu0 }
 0x78d   :  { %5515 = vmatmul.mubr.msk.f32.vlgmr.msra.gmra.mxu1 %vm350_vm4, %v985_v23 }
 0x78e   :  { %v5511_v24 = vpop.f32.mrf.mxu0  ;;  %5524 = vmatprep.mubr.msk.f32.mxu1 %vm5987_vm3, %v5985_v16 }
 0x790   :  { %v1137_v25 = vpop.f32.mrf.mxu0 }
 0x791   :  { %v1138_v27 = vadd.f32 %v1137_v25, %v6096_v26 }
 0x792   :  { %v5521_v28 = vpop.f32.mrf.mxu0 }
 0x793   :  { %v1141_v29 = vsel %vm350_vm4, %v1138_v27, -inf }
 0x794   :  { %1142 = vmax.xlane.f32.xlu0 %v1141_v29 }
 0x7aa   :  { %1152 = vrot.lane.b32.xlu0 %v6068_v21, %s6000_s14 }
 0x7ae   :  { %1478 = vrot.lane.b32.xlu0 %v6066_v19, %s5990_s28 }
 0x81d   :  { %v1143_v30 = vpop.xlane.xlu0 %1142 }
 0x81e   :  { %v1144_v31 = vsub.f32 %v1138_v27, %v1143_v30 }
 0x820   :  { %v1145_v32 = vmul.f32 1.442695, %v1144_v31 }
 0x821   :  { %v1153_v33 = vpop.permute.xlu0 %1152 }
 0x822   :  { %5908 = vpow2.f32 %v1145_v32  ;;  %5523 = vmatpush3.msra.mxu1 %v1153_v33 }
 0x823   :  { %5532 = vmatprep.subr.mxu1 %v5985_v16 }
 0x825   :  { %v1479_v43 = vpop.permute.xlu0 %1478 }
 0x82f   :  { %v5909_v34 = vpop.eup %5908 }
 0x830   :  { %v1147_v35 = vsel %vm350_vm4, %v5909_v34, 0.0 }
 0x831   :  { %1148 = vadd.xlane.f32.xlu1 %v1147_v35 }
 0x842   :  { %1476 = vrot.lane.b32.xlu1 %v6185_v36, %s5989_s27 }
 0x84d   :  { %v1058_v21 = vpop.f32.mrf.mxu1 }
 0x84e   :  { %v1062_v37 = vadd.f32 %v1058_v21, %v6146_v0 }
 0x84f   :  { %v5516_v38 = vpop.f32.mrf.mxu1 }
 0x8ba   :  { %v1149_v40 = vpop.xlane.xlu1 %1148 }
 0x8bb   :  { %5910 = vrcp.f32 %v1149_v40 }
 0x8be   :  { %v1477_v44 = vpop.permute.xlu1 %1476 }
 0x8c8   :  { %v5911_v41 = vpop.eup %5910 }
 0x8c9   :  { %v1151_v42 = vmul.f32 %v5911_v41, %v5909_v34 }
 0x8cb   :  { %5525 = vmatmul.mubr.msk.f32.vlgmr.msra.gmra.mxu1 %vm350_vm4, %v1151_v42 }
 0x8cc   :  { %5533 = vmatpush3.xpose.msk.msra.mxu1 %vm350_vm4, %v1313_v39  ;;  %5534 = vmatprep.mubr.msk.f32.mxu1 %vm5987_vm3, %v5985_v16 }
 0x8cd   :  { %5542 = vmatprep.subr.mxu1 %v5985_v16 }
 0x8cf   :  { %5535 = vmatmul.mubr.msk.f32.vlgmr.msra.gmra.mxu1 %vm350_vm4, %v6185_v36 }
 0x8d0   :  { %5543 = vmatpush3.xpose.msk.msra.mxu1 %vm350_vm4, %v1479_v43  ;;  %5544 = vmatprep.mubr.msk.f32.mxu1 %vm5987_vm3, %v5985_v16 }
 0x8d1   :  { %5552 = vmatprep.subr.mxu1 %v5985_v16 }
 0x8d3   :  { %5545 = vmatmul.mubr.msk.f32.vlgmr.msra.gmra.mxu1 %vm350_vm4, %v1477_v44  ;;  %v5203_v44 = vld [vmem:[%s5152_s18] ss:$0 sm:$0xff]  ;;  %s5160_s18 = sld [smem:[%s6689_s0 + %s6010_s15]]   ;;  %s6025_s15 = smov 30  }
 0x8d4   :  { %5553 = vmatpush3.msra.mxu1 %v6130_v54  ;;  %5554 = vmatprep.mubr.msk.f32.mxu1 %vm5987_vm3, %v5985_v16 }
 0x8d5   :  { %5562 = vmatprep.subr.mxu1 %v5985_v16 }
 0x98b   :  { %v1224_v46 = vpop.f32.mrf.mxu1 }
 0x98c   :  { %5530 = vmatmul.mubr.msk.f32.vlgmr.msra.gmra.mxu0 %vm350_vm4, %v1224_v46 }
 0x98d   :  { %v5526_v47 = vpop.f32.mrf.mxu1  ;;  %5539 = vmatprep.mubr.msk.f32.mxu0 %vm5987_vm3, %v5985_v16 }
 0x98f   :  { %v1385_v48 = vpop.f32.mrf.mxu1 }
 0x990   :  { %v1386_v49 = vadd.f32 %v1385_v48, %v6096_v26 }
 0x991   :  { %v5536_v50 = vpop.f32.mrf.mxu1 }
 0x992   :  { %v1389_v51 = vsel %vm350_vm4, %v1386_v49, -inf }
 0x993   :  { %1390 = vmax.xlane.f32.xlu0 %v1389_v51  ;;  %v1550_v52 = vpop.f32.mrf.mxu1 }
 0x994   :  { %v1551_v54 = vadd.f32 %v1550_v52, %v6096_v26 }
 0x995   :  { %v5546_v55 = vpop.f32.mrf.mxu1 }
 0x996   :  { %v1554_v56 = vsel %vm350_vm4, %v1551_v54, -inf }
 0x997   :  { %1555 = vmax.xlane.f32.xlu1 %v1554_v56 }
 0x9a8   :  { %1400 = vrot.lane.b32.xlu1 %v6066_v19, %s5993_s4 }
 0x9ac   :  { %1789 = vrot.lane.b32.xlu1 %v6066_v19, %s5994_s5 }
 0x9b0   :  { %1787 = vrot.lane.b32.xlu1 %v6185_v36, %s5995_s6 }
 0xa1c   :  { %v1391_v57 = vpop.xlane.xlu0 %1390 }
 0xa1d   :  { %v1392_v58 = vsub.f32 %v1386_v49, %v1391_v57 }
 0xa1f   :  { %v1393_v59 = vmul.f32 1.442695, %v1392_v58 }
 0xa20   :  { %v1556_v60 = vpop.xlane.xlu1 %1555 }
 0xa21   :  { %5912 = vpow2.f32 %v1393_v59  ;;  %v1557_v61 = vsub.f32 %v1551_v54, %v1556_v60 }
 0xa23   :  { %v1558_v62 = vmul.f32 1.442695, %v1557_v61 }
 0xa24   :  { %v1401_v63 = vpop.permute.xlu1 %1400 }
 0xa25   :  { %5914 = vpow2.f32 %v1558_v62  ;;  %5538 = vmatpush3.msra.mxu0 %v1401_v63 }
 0xa26   :  { %5547 = vmatprep.subr.mxu0 %v5985_v16 }
 0xa28   :  { %v1790_v18 = vpop.permute.xlu1 %1789 }
 0xa2e   :  { %v5913_v0 = vpop.eup %5912 }
 0xa2f   :  { %v1395_v1 = vsel %vm350_vm4, %v5913_v0, 0.0 }
 0xa30   :  { %1396 = vadd.xlane.f32.xlu0 %v1395_v1 }
 0xa32   :  { %v5915_v2 = vpop.eup %5914 }
 0xa33   :  { %v1560_v3 = vsel %vm350_vm4, %v5915_v2, 0.0 }
 0xa34   :  { %1561 = vadd.xlane.f32.xlu0 %v1560_v3 }
 0xa4a   :  { %1565 = vrot.lane.b32.xlu0 %v6066_v19, %s5992_s3 }
 0xa4c   :  { %v1297_v4 = vpop.f32.mrf.mxu0 }
 0xa4d   :  { %v6229_v5 = vadd.f32 %v1297_v4, %v1062_v37 }
 0xa4e   :  { %v5531_v6 = vpop.f32.mrf.mxu0 }
 0xa4f   :  { %v1309_v48 = vadd.f32 %v5203_v44, %v6229_v5 }
 0xa51   :  { %v2266_v52 = vadd.f32 %v1309_v48, %v6049_v14  ;;  %v2409_v48 = vld [vmem:[%s5157_s16 + $0x10] sm:$0xff] }
 0xa53   :  { %v2270_v54 = vsel %vm260_vm2, %v2266_v52, 0.0 }
 0xab9   :  { %v1397_v7 = vpop.xlane.xlu0 %1396 }
 0xaba   :  { %5916 = vrcp.f32 %v1397_v7 }
 0xabd   :  { %v1562_v8 = vpop.xlane.xlu0 %1561 }
 0xabe   :  { %5918 = vrcp.f32 %v1562_v8 }
 0xac1   :  { %v1566_v11 = vpop.permute.xlu0 %1565 }
 0xac7   :  { %v5917_v9 = vpop.eup %5916 }
 0xac8   :  { %v1399_v10 = vmul.f32 %v5917_v9, %v5913_v0 }
 0xaca   :  { %5540 = vmatmul.mubr.msk.f32.vlgmr.msra.gmra.mxu0 %vm350_vm4, %v1399_v10 }
 0xacb   :  { %v5919_v12 = vpop.eup %5918  ;;  %5548 = vmatpush3.msra.mxu0 %v1566_v11  ;;  %5549 = vmatprep.mubr.msk.f32.mxu0 %vm5987_vm3, %v5985_v16 }
 0xacc   :  { %v1564_v13 = vmul.f32 %v5919_v12, %v5915_v2  ;;  %5557 = vmatprep.subr.mxu0 %v5985_v16 }
 0xace   :  { %5550 = vmatmul.mubr.msk.f32.vlgmr.msra.gmra.mxu0 %vm350_vm4, %v1564_v13 }
 0xacf   :  { %5558 = vmatpush3.msra.mxu0 %v6126_v53  ;;  %5559 = vmatprep.mubr.msk.f32.mxu0 %vm5987_vm3, %v5985_v16  ;;  %v1788_v53 = vpop.permute.xlu1 %1787 }
 0xad0   :  { %5567 = vmatprep.subr.mxu0 %v5985_v16 }
 0xb8a   :  { %v1472_v17 = vpop.f32.mrf.mxu0 }
 0xb8b   :  { %5560 = vmatmul.mubr.msk.f32.vlgmr.msra.gmra.mxu0 %vm350_vm4, %v1472_v17 }
 0xb8c   :  { %v5541_v20 = vpop.f32.mrf.mxu0  ;;  %5569 = vmatprep.mubr.msk.f32.mxu0 %vm5987_vm3, %v5985_v16 }
 0xb8e   :  { %v1637_v23 = vpop.f32.mrf.mxu0 }
 0xb8f   :  { %5555 = vmatmul.mubr.msk.f32.vlgmr.msra.gmra.mxu1 %vm350_vm4, %v1637_v23 }
 0xb90   :  { %5563 = vmatpush3.xpose.msk.msra.mxu1 %vm350_vm4, %v1790_v18  ;;  %v5551_v24 = vpop.f32.mrf.mxu0  ;;  %5564 = vmatprep.mubr.msk.f32.mxu1 %vm5987_vm3, %v5985_v16 }
 0xb91   :  { %5572 = vmatprep.subr.mxu1 %v5985_v16 }
 0xb93   :  { %5565 = vmatmul.mubr.msk.f32.vlgmr.msra.gmra.mxu1 %vm350_vm4, %v1788_v53 }
 0xb94   :  { %5573 = vmatpush3.msra.mxu1 %v6169_v22  ;;  %5574 = vmatprep.mubr.msk.f32.mxu1 %vm5987_vm3, %v5985_v16 }
 0xb95   :  { %5582 = vmatprep.subr.mxu1 %v5985_v16 }
 0xc4b   :  { %v1783_v25 = vpop.f32.mrf.mxu0 }
 0xc4d   :  { %v5561_v27 = vpop.f32.mrf.mxu0 }
 0xc4f   :  { %v1710_v28 = vpop.f32.mrf.mxu1 }
 0xc50   :  { %v1784_v29 = vadd.f32 %v1783_v25, %v1710_v28  ;;  %v5220_v28 = vld [vmem:[%s5153_s22] ss:$0 sm:$0xff]  ;;  %s5162_s22 = sld [smem:[%s6689_s0 + %s6011_s19]]   ;;  %s6026_s19 = smov 34  }
 0xc51   :  { %v5556_v30 = vpop.f32.mrf.mxu1 }
 0xc52   :  { %v5221_v30 = vld [vmem:[%s5154_s29] ss:$0 sm:$0xff]  ;;  %s6397_s29 = sld [smem:[%s6689_s0 + %s6012_s23]]   ;;  %s6027_s23 = smov 32  }
 0xc53   :  { %v1861_v31 = vpop.f32.mrf.mxu1 }
 0xc54   :  { %v1862_v32 = vadd.f32 %v1861_v31, %v6096_v26 }
 0xc55   :  { %v5566_v33 = vpop.f32.mrf.mxu1 }
 0xc56   :  { %v1865_v34 = vsel %vm350_vm4, %v1862_v32, -inf  ;;  %v2316_v33 = vld [vmem:[%s5155_s8 + $0x18] sm:$0xff] }
 0xc57   :  { %1866 = vmax.xlane.f32.xlu0 %v1865_v34  ;;  %v2315_v34 = vld [vmem:[%s5155_s8 + $0x10] sm:$0xff] }
 0xc6d   :  { %1876 = vrot.lane.b32.xlu0 %v6066_v19, %s5999_s13 }
 0xc71   :  { %2026 = vrot.lane.b32.xlu0 %v6185_v36, %s5998_s12 }
 0xce0   :  { %v1867_v22 = vpop.xlane.xlu0 %1866 }
 0xce1   :  { %v1868_v35 = vsub.f32 %v1862_v32, %v1867_v22  ;;  %v2314_v22 = vld [vmem:[%s5155_s8 + $0x8] sm:$0xff] }
 0xce3   :  { %v1869_v21 = vmul.f32 1.442695, %v1868_v35  ;;  %v2313_v35 = vld [vmem:[%s5155_s8] sm:$0xff]  ;;  %s5167_s8 = sld [smem:[%s6689_s0 + %s6016_s30]]  }
 0xce4   :  { %v1877_v37 = vpop.permute.xlu0 %1876 }
 0xce5   :  { %5920 = vpow2.f32 %v1869_v21  ;;  %5568 = vmatpush3.msra.mxu0 %v1877_v37  ;;  %v2414_v21 = vld [vmem:[%s5157_s16 + $0x38] sm:$0xff]  ;;  %v2413_v37 = vld [vmem:[%s5157_s16 + $0x30] sm:$0xff] }
 0xce6   :  { %5577 = vmatprep.subr.mxu0 %v5985_v16 }
 0xce8   :  { %v2027_v43 = vpop.permute.xlu0 %2026 }
 0xcf2   :  { %v5921_v38 = vpop.eup %5920 }
 0xcf3   :  { %v1871_v39 = vsel %vm350_vm4, %v5921_v38, 0.0 }
 0xcf4   :  { %1872 = vadd.xlane.f32.xlu1 %v1871_v39  ;;  %v2411_v39 = vld [vmem:[%s5157_s16 + $0x20] sm:$0xff] }
 0xd05   :  { %2028 = vrot.lane.b32.xlu1 %v6066_v19, %s5997_s11 }
 0xd7d   :  { %v1873_v40 = vpop.xlane.xlu1 %1872 }
 0xd7e   :  { %5922 = vrcp.f32 %v1873_v40 }
 0xd81   :  { %v2029_v36 = vpop.permute.xlu1 %2028 }
 0xd8b   :  { %v5923_v41 = vpop.eup %5922 }
 0xd8c   :  { %v1875_v42 = vmul.f32 %v5923_v41, %v5921_v38  ;;  %v2412_v38 = vld [vmem:[%s5157_s16 + $0x28] sm:$0xff] }
 0xd8e   :  { %5570 = vmatmul.mubr.msk.f32.vlgmr.msra.gmra.mxu0 %vm350_vm4, %v1875_v42 }
 0xd8f   :  { %5578 = vmatpush3.xpose.msk.msra.mxu0 %vm350_vm4, %v2029_v36  ;;  %5579 = vmatprep.mubr.msk.f32.mxu0 %vm5987_vm3, %v5985_v16 }
 0xd90   :  { %5587 = vmatprep.subr.mxu0 %v5985_v16 }
 0xd92   :  { %5580 = vmatmul.mubr.msk.f32.vlgmr.msra.gmra.mxu0 %vm350_vm4, %v2027_v43 }
 0xd93   :  { %5588 = vmatpush3.msra.mxu0 %v6207_v45  ;;  %5589 = vmatprep.mubr.msk.f32.mxu0 %vm5987_vm3, %v5985_v16 }
 0xd94   :  { %5603 = vmatprep.subr.mxu0 %v2414_v21 }
 0xe4e   :  { %v1948_v46 = vpop.f32.mrf.mxu0 }
 0xe4f   :  { %5575 = vmatmul.mubr.msk.f32.vlgmr.msra.gmra.mxu1 %vm350_vm4, %v1948_v46 }
 0xe50   :  { %v5571_v47 = vpop.f32.mrf.mxu0  ;;  %5584 = vmatprep.mubr.msk.f32.mxu1 %vm5987_vm3, %v5985_v16 }
 0xe51   :  { %v2410_v47 = vld [vmem:[%s5157_s16 + $0x18] sm:$0xff] }
 0xe52   :  { %v2100_v49 = vpop.f32.mrf.mxu0 }
 0xe53   :  { %v2101_v45 = vadd.f32 %v2100_v49, %v6096_v26  ;;  %v2408_v49 = vld [vmem:[%s5157_s16 + $0x8] sm:$0xff] }
 0xe54   :  { %v5581_v50 = vpop.f32.mrf.mxu0 }
 0xe55   :  { %v2104_v51 = vsel %vm350_vm4, %v2101_v45, -inf  ;;  %v5222_v50 = vld [vmem:[%s5156_s20] ss:$0 sm:$0xff]  ;;  %s5168_s20 = sld [smem:[%s6689_s0 + %s6018_s17]]  }
 0xe56   :  { %2105 = vmax.xlane.f32.xlu1 %v2104_v51 }
 0xe5a   :  { %2271 = vadd.xlane.f32.xlu1 %v2270_v54 }
 0xedf   :  { %v2106_v55 = vpop.xlane.xlu1 %2105 }
 0xee0   :  { %v2107_v56 = vsub.f32 %v2101_v45, %v2106_v55  ;;  %v2407_v45 = vld [vmem:[%s5157_s16] sm:$0xff]  ;;  %s6582_s16 = sld [smem:[%s6689_s0 + %s6017_s9]]  }
 0xee2   :  { %v2108_v57 = vmul.f32 1.442695, %v2107_v56 }
 0xee3   :  { %v2272_v4 = vpop.xlane.xlu1 %2271 }
 0xee4   :  { %5924 = vpow2.f32 %v2108_v57  ;;  %v2277_v5 = vmul.f32 0.03125, %v2272_v4 }
 0xee6   :  { %v2279_v8 = vsub.f32 %v2266_v52, %v2277_v5 }
 0xee8   :  { %v2281_v12 = vmul.f32 %v2279_v8, %v2279_v8 }
 0xeea   :  { %v2283_v13 = vsel %vm260_vm2, %v2281_v12, 0.0  ;;  %v2552_v12 = vld [vmem:[%s5161_s1 + $0x10] sm:$0xff] }
 0xef1   :  { %v5925_v58 = vpop.eup %5924 }
 0xef2   :  { %v2110_v59 = vsel %vm350_vm4, %v5925_v58, 0.0 }
 0xef3   :  { %2111 = vadd.xlane.f32.xlu0 %v2110_v59  ;;  %v5225_v59 = vld [vmem:[%s5158_s24] ss:$0 sm:$0xff]  ;;  %s5170_s24 = sld [smem:[%s6689_s0 + %s6019_s21]]  }
 0xf09   :  { %2115 = vrot.lane.b32.xlu0 %v6066_v19, %s6000_s14 }
 0xf0f   :  { %v2021_v60 = vpop.f32.mrf.mxu1 }
 0xf10   :  { %v2025_v61 = vadd.f32 %v2021_v60, %v1784_v29 }
 0xf11   :  { %v5576_v62 = vpop.f32.mrf.mxu1 }
 0xf7c   :  { %v2112_v63 = vpop.xlane.xlu0 %2111 }
 0xf7d   :  { %5926 = vrcp.f32 %v2112_v63 }
 0xf80   :  { %v2116_v14 = vpop.permute.xlu0 %2115 }
 0xf81   :  { %5583 = vmatpush3.msra.mxu1 %v2116_v14 }
 0xf82   :  { %5592 = vmatprep.subr.mxu1 %v2316_v33 }
 0xf8a   :  { %v5927_v0 = vpop.eup %5926 }
 0xf8b   :  { %v2114_v1 = vmul.f32 %v5927_v0, %v5925_v58 }
 0xf8d   :  { %5585 = vmatmul.mubr.msk.f32.vlgmr.msra.gmra.mxu1 %vm350_vm4, %v2114_v1 }
 0xf8e   :  { %5593 = vmatpush3.msra.mxu1 %v2316_v33 }
 0xf8f   :  { %5594 = vmatprep.subr.mxu1 %v2315_v34 }
 0xf90   :  { %5595 = vmatpush3.msra.mxu1 %v2315_v34 }
 0xf91   :  { %5596 = vmatprep.subr.mxu1 %v2314_v22 }
 0xf92   :  { %5597 = vmatpush3.msra.mxu1 %v2314_v22 }
 0xf93   :  { %5598 = vmatprep.subr.mxu1 %v2313_v35 }
 0xf94   :  { %5599 = vmatpush3.msra.mxu1 %v2313_v35  ;;  %v5230_v35 = vld [vmem:[%s5162_s22] ss:$0 sm:$0xff]  ;;  %s5178_s22 = sld [smem:[%s6689_s0 + %s6026_s19]]  }
0x104d   :  { %v2187_v2 = vpop.f32.mrf.mxu1 }
0x104e   :  { %5590 = vmatmul.mubr.msk.f32.vlgmr.msra.gmra.mxu0 %vm350_vm4, %v2187_v2 }
0x104f   :  { %v5586_v3 = vpop.f32.mrf.mxu1  ;;  %5604 = vmatpush3.msra.mxu0 %v2414_v21 }
0x1050   :  { %5605 = vmatprep.subr.mxu0 %v2413_v37 }
0x1051   :  { %5606 = vmatpush3.msra.mxu0 %v2413_v37 }
0x1052   :  { %5607 = vmatprep.subr.mxu0 %v2412_v38 }
0x1053   :  { %5608 = vmatpush3.msra.mxu0 %v2412_v38 }
0x1054   :  { %5609 = vmatprep.subr.mxu0 %v2411_v39 }
0x1055   :  { %5610 = vmatpush3.msra.mxu0 %v2411_v39 }
0x1056   :  { %5611 = vmatprep.subr.mxu0 %v2410_v47 }
0x1057   :  { %5612 = vmatpush3.msra.mxu0 %v2410_v47 }
0x1058   :  { %5613 = vmatprep.subr.mxu0 %v2409_v48 }
0x1059   :  { %5614 = vmatpush3.msra.mxu0 %v2409_v48 }
0x105a   :  { %5615 = vmatprep.subr.mxu0 %v2408_v49 }
0x105b   :  { %5616 = vmatpush3.msra.mxu0 %v2408_v49 }
0x105c   :  { %5617 = vmatprep.subr.mxu0 %v2407_v45 }
0x105d   :  { %5618 = vmatpush3.msra.mxu0 %v2407_v45 }
0x105e   :  { %5638 = vmatprep.subr.mxu0 %v5985_v16 }
0x110e   :  { %v2260_v6 = vpop.f32.mrf.mxu0 }
0x110f   :  { %v2264_v7 = vadd.f32 %v2260_v6, %v2025_v61 }
0x1110   :  { %v5591_v19 = vpop.f32.mrf.mxu0 }
0x1111   :  { %v2265_v9 = vadd.f32 %v5203_v44, %v2264_v7 }
0x1113   :  { %v2267_v10 = vadd.f32 %v2265_v9, %v6051_v15 }
0x1115   :  { %v2273_v11 = vsel %vm260_vm2, %v2267_v10, 0.0 }
0x1116   :  { %2274 = vadd.xlane.f32.xlu1 %v2273_v11  ;;  %v2553_v11 = vld [vmem:[%s5161_s1 + $0x18] sm:$0xff] }
0x1117   :  { %5622 = vmatprep.subr.mxu1 %v2553_v11 }
0x111a   :  { %2284 = vadd.xlane.f32.xlu1 %v2283_v13  ;;  %v2551_v13 = vld [vmem:[%s5161_s1 + $0x8] sm:$0xff] }
0x119f   :  { %v2275_v17 = vpop.xlane.xlu1 %2274 }
0x11a0   :  { %v2278_v18 = vmul.f32 0.03125, %v2275_v17  ;;  %v2550_v17 = vld [vmem:[%s5161_s1] sm:$0xff] }
0x11a2   :  { %v2280_v20 = vsub.f32 %v2267_v10, %v2278_v18 }
0x11a3   :  { %v2285_v23 = vpop.xlane.xlu1 %2284 }
0x11a4   :  { %v2289_v24 = vmul.f32 0.03125, %v2285_v23  ;;  %v2282_v53 = vmul.f32 %v2280_v20, %v2280_v20 }
0x11a6   :  { %v2291_v25 = vadd.f32 1e-05, %v2289_v24  ;;  %v2286_v27 = vsel %vm260_vm2, %v2282_v53, 0.0 }
0x11a7   :  { %2287 = vadd.xlane.f32.xlu1 %v2286_v27 }
0x11a8   :  { %5928 = vrsqrt.f32 %v2291_v25 }
0x11b5   :  { %v5929_v15 = vpop.eup %5928 }
0x11b6   :  { %v2295_v29 = vmul.f32 %v5929_v15, %v2279_v8  ;;  %v5228_v15 = vld [vmem:[%s5159_s10] ss:$0 sm:$0xff]  ;;  %s5177_s10 = sld [smem:[%s6689_s0 + %s6024_s7]]  }
0x11b8   :  { %v2303_v31 = vmul.f32 %v5220_v28, %v2295_v29  ;;  %v5229_v29 = vld [vmem:[%s5160_s18] ss:$0 sm:$0xff]  ;;  %s5174_s18 = sld [smem:[%s6689_s0 + %s6025_s15]]  }
0x11ba   :  { %v6298_v32 = vadd.f32 %v5221_v30, %v2303_v31 }
0x11bc   :  { %5600 = vmatprep.mubr.msk.f32.mxu1 %vm260_vm2, %v6298_v32 }
0x1230   :  { %v2288_v40 = vpop.xlane.xlu1 %2287 }
0x1231   :  { %v2290_v41 = vmul.f32 0.03125, %v2288_v40 }
0x1233   :  { %v2292_v42 = vadd.f32 1e-05, %v2290_v41 }
0x1235   :  { %5930 = vrsqrt.f32 %v2292_v42 }
0x1242   :  { %v5931_v36 = vpop.eup %5930 }
0x1243   :  { %v2296_v43 = vmul.f32 %v5931_v36, %v2280_v20 }
0x1245   :  { %v2304_v44 = vmul.f32 %v5220_v28, %v2296_v43 }
0x1247   :  { %v2312_v46 = vadd.f32 %v5221_v30, %v2304_v44 }
0x1249   :  { %5601 = vmatmul.mubr.msk.f32.vlgmr.msra.gmra.mxu1 %vm260_vm2, %v2312_v46 }
0x124a   :  { %5623 = vmatpush3.msra.mxu1 %v2553_v11 }
0x124b   :  { %5624 = vmatprep.subr.mxu1 %v2552_v12 }
0x124c   :  { %5625 = vmatpush3.msra.mxu1 %v2552_v12 }
0x124d   :  { %5626 = vmatprep.subr.mxu1 %v2551_v13 }
0x124e   :  { %5627 = vmatpush3.msra.mxu1 %v2551_v13 }
0x124f   :  { %5628 = vmatprep.subr.mxu1 %v2550_v17 }
0x1250   :  { %5629 = vmatpush3.msra.mxu1 %v2550_v17 }
0x1251   :  { %5633 = vmatprep.subr.mxu1 %v5985_v16 }
0x1309   :  { %v5602_v51 = vpop.f32.mrf.mxu1 }
0x130a   :  { %v2402_v52 = vadd.f32 %v5602_v51, %v5222_v50 }
0x130b   :  { %v2396_v54 = vpop.f32.mrf.mxu1 }
0x130c   :  { %v2397_v55 = vadd.f32 %v5222_v50, %v2396_v54  ;;  %v2406_v57 = vmax.f32 %v2402_v52, 0.0 }
0x130e   :  { %v2405_v56 = vmax.f32 %v2397_v55, 0.0 }
0x1310   :  { %5619 = vmatprep.mubr.msk.f32.mxu0 %vm2422_vm5, %v2405_v56 }
0x1311   :  { %5620 = vmatmul.mubr.msk.f32.vlgmr.msra.gmra.mxu0 %vm2422_vm5, %v2406_v57 }
0x1312   :  { %5640 = vmatprep.mubr.msk.f32.mxu0 %vm5987_vm3, %v5985_v16 }
0x13d1   :  { %v5621_v58 = vpop.f32.mrf.mxu0 }
0x13d2   :  { %v2501_v61 = vadd.f32 %v5621_v58, %v5225_v59 }
0x13d3   :  { %v2495_v60 = vpop.f32.mrf.mxu0 }
0x13d4   :  { %v2496_v62 = vadd.f32 %v5225_v59, %v2495_v60  ;;  %v2505_v0 = vadd.f32 %v2501_v61, %v2312_v46 }
0x13d6   :  { %v2504_v63 = vadd.f32 %v2496_v62, %v6298_v32  ;;  %v2511_v1 = vsel %vm260_vm2, %v2505_v0, 0.0 }
0x13d8   :  { %v2508_v14 = vsel %vm260_vm2, %v2504_v63, 0.0 }
0x13d9   :  { %2509 = vadd.xlane.f32.xlu1 %v2508_v14 }
0x13dd   :  { %2512 = vadd.xlane.f32.xlu1 %v2511_v1 }
0x1462   :  { %v2510_v2 = vpop.xlane.xlu1 %2509 }
0x1463   :  { %v2514_v3 = vmul.f32 0.03125, %v2510_v2 }
0x1465   :  { %v2516_v4 = vsub.f32 %v2504_v63, %v2514_v3 }
0x1466   :  { %v2513_v5 = vpop.xlane.xlu1 %2512 }
0x1467   :  { %v2515_v6 = vmul.f32 0.03125, %v2513_v5  ;;  %v2518_v7 = vmul.f32 %v2516_v4, %v2516_v4  ;;  %v6404_v5 = vld [vmem:[%s6397_s29 + $0x8] sm:$0xff] }
0x1469   :  { %v2517_v19 = vsub.f32 %v2505_v0, %v2515_v6  ;;  %v2520_v8 = vsel %vm260_vm2, %v2518_v7, 0.0 }
0x146a   :  { %2521 = vadd.xlane.f32.xlu0 %v2520_v8 }
0x146b   :  { %v2519_v9 = vmul.f32 %v2517_v19, %v2517_v19 }
0x146d   :  { %v2523_v10 = vsel %vm260_vm2, %v2519_v9, 0.0 }
0x146e   :  { %2524 = vadd.xlane.f32.xlu1 %v2523_v10 }
0x14f3   :  { %v2522_v18 = vpop.xlane.xlu0 %2521 }
0x14f4   :  { %v2526_v20 = vmul.f32 0.03125, %v2522_v18 }
0x14f6   :  { %v2528_v23 = vadd.f32 1e-05, %v2526_v20 }
0x14f7   :  { %v2525_v24 = vpop.xlane.xlu1 %2524 }
0x14f8   :  { %5932 = vrsqrt.f32 %v2528_v23  ;;  %v2527_v53 = vmul.f32 0.03125, %v2525_v24  ;;  %v6421_v23 = vld [vmem:[%s6093_s2] sm:$0xff] }
0x14fa   :  { %v2529_v25 = vadd.f32 1e-05, %v2527_v53 }
0x14fc   :  { %5934 = vrsqrt.f32 %v2529_v25 }
0x1505   :  { %v5933_v27 = vpop.eup %5932 }
0x1506   :  { %v2532_v28 = vmul.f32 %v5933_v27, %v2516_v4  ;;  %v6400_v4 = vld [vmem:[%s6397_s29] sm:$0xff] }
0x1508   :  { %v2540_v30 = vmul.f32 %v5228_v15, %v2532_v28 }
0x1509   :  { %v5935_v31 = vpop.eup %5934 }
0x150a   :  { %v2533_v32 = vmul.f32 %v5935_v31, %v2517_v19  ;;  %v6335_v33 = vadd.f32 %v5229_v29, %v2540_v30 }
0x150c   :  { %v2541_v34 = vmul.f32 %v5228_v15, %v2533_v32  ;;  %5630 = vmatprep.mubr.msk.f32.mxu1 %vm260_vm2, %v6335_v33 }
0x150e   :  { %v6339_v22 = vadd.f32 %v5229_v29, %v2541_v34 }
0x1510   :  { %5631 = vmatmul.mubr.msk.f32.vlgmr.msra.gmra.mxu1 %vm260_vm2, %v6339_v22 }
0x1511   :  { %5635 = vmatprep.mubr.msk.f32.mxu1 %vm5987_vm3, %v5985_v16 }
0x15d0   :  { %v5632_v21 = vpop.f32.mrf.mxu1 }
0x15d1   :  { %v6348_v37 = vadd.f32 %v5632_v21, %v5230_v35 }
0x15d2   :  { %v2633_v38 = vpop.f32.mrf.mxu1 }
0x15d3   :  { %v6350_v39 = vadd.f32 %v5230_v35, %v2633_v38 }
0x15d5   :  { %2648 = vrot.lane.b32.xlu1 %v6350_v39, %s5988_s26  ;;  %v6357_v40 = vmul.f32 0.35355338, %v6350_v39 }
0x15d9   :  { %2814 = vrot.lane.b32.xlu1 %v6350_v39, %s5990_s28 }
0x15dd   :  { %2812 = vrot.lane.b32.xlu1 %v6357_v40, %s5989_s27 }
0x1647   :  { %v2649_v41 = vpop.permute.xlu1 %2648 }
0x1648   :  { %5634 = vmatpush3.xpose.msk.msra.mxu1 %vm350_vm4, %v2649_v41 }
0x1649   :  { %5643 = vmatprep.subr.mxu1 %v5985_v16 }
0x164b   :  { %v2815_v42 = vpop.permute.xlu1 %2814  ;;  %5636 = vmatmul.mubr.msk.f32.vlgmr.msra.gmra.mxu1 %vm350_vm4, %v6357_v40 }
0x164c   :  { %5644 = vmatpush3.xpose.msk.msra.mxu1 %vm350_vm4, %v2815_v42  ;;  %5645 = vmatprep.mubr.msk.f32.mxu1 %vm5987_vm3, %v5985_v16 }
0x164d   :  { %5653 = vmatprep.subr.mxu1 %v5985_v16 }
0x164f   :  { %v2813_v36 = vpop.permute.xlu1 %2812 }
0x1650   :  { %5646 = vmatmul.mubr.msk.f32.vlgmr.msra.gmra.mxu1 %vm350_vm4, %v2813_v36 }
0x1651   :  { %5655 = vmatprep.mubr.msk.f32.mxu1 %vm5987_vm3, %v5985_v16  ;;  %5654 = vmatpush3.msra.mxu1 %v6404_v5 }
0x1652   :  { %5663 = vmatprep.subr.mxu1 %v5985_v16 }
0x170b   :  { %v2721_v43 = vpop.f32.mrf.mxu1 }
0x170c   :  { %v2722_v44 = vadd.f32 %v2721_v43, %v6096_v26 }
0x170d   :  { %v5637_v46 = vpop.f32.mrf.mxu1 }
0x170e   :  { %v2725_v47 = vsel %vm350_vm4, %v2722_v44, -inf }
0x170f   :  { %2726 = vmax.xlane.f32.xlu0 %v2725_v47  ;;  %v6456_v47 = vmul.f32 0.35355338, %v6348_v37 }
0x1710   :  { %v2886_v48 = vpop.f32.mrf.mxu1 }
0x1711   :  { %v2887_v49 = vadd.f32 %v2886_v48, %v6096_v26 }
0x1712   :  { %v5647_v45 = vpop.f32.mrf.mxu1 }
0x1713   :  { %v2890_v50 = vsel %vm350_vm4, %v2887_v49, -inf }
0x1714   :  { %2891 = vmax.xlane.f32.xlu1 %v2890_v50 }
0x1725   :  { %2736 = vrot.lane.b32.xlu0 %v6350_v39, %s5993_s4  ;;  %3125 = vrot.lane.b32.xlu1 %v6350_v39, %s5994_s5 }
0x1798   :  { %v2727_v51 = vpop.xlane.xlu0 %2726 }
0x1799   :  { %v2728_v52 = vsub.f32 %v2722_v44, %v2727_v51 }
0x179b   :  { %v2729_v54 = vmul.f32 1.442695, %v2728_v52 }
0x179c   :  { %v2737_v55 = vpop.permute.xlu0 %2736 }
0x179d   :  { %5936 = vpow2.f32 %v2729_v54  ;;  %5639 = vmatpush3.msra.mxu0 %v2737_v55  ;;  %v2892_v56 = vpop.xlane.xlu1 %2891 }
0x179e   :  { %v2893_v57 = vsub.f32 %v2887_v49, %v2892_v56  ;;  %5648 = vmatprep.subr.mxu0 %v5985_v16 }
0x17a0   :  { %v2894_v26 = vmul.f32 1.442695, %v2893_v57 }
0x17a1   :  { %v3126_v8 = vpop.permute.xlu1 %3125 }
0x17a2   :  { %5938 = vpow2.f32 %v2894_v26 }
0x17aa   :  { %v5937_v58 = vpop.eup %5936 }
0x17ab   :  { %v2731_v59 = vsel %vm350_vm4, %v5937_v58, 0.0 }
0x17ac   :  { %2732 = vadd.xlane.f32.xlu0 %v2731_v59 }
0x17af   :  { %v5939_v60 = vpop.eup %5938 }
0x17b0   :  { %v2896_v61 = vsel %vm350_vm4, %v5939_v60, 0.0 }
0x17b1   :  { %2897 = vadd.xlane.f32.xlu0 %v2896_v61  ;;  %v6481_v61 = vld [vmem:[%s6397_s29 + $0x18] sm:$0xff] }
0x17c7   :  { %2901 = vrot.lane.b32.xlu0 %v6350_v39, %s5992_s3 }
0x17cb   :  { %3123 = vrot.lane.b32.xlu0 %v6357_v40, %s5995_s6 }
0x1835   :  { %v2733_v62 = vpop.xlane.xlu0 %2732 }
0x1836   :  { %5940 = vrcp.f32 %v2733_v62 }
0x183a   :  { %v2898_v63 = vpop.xlane.xlu0 %2897 }
0x183b   :  { %5942 = vrcp.f32 %v2898_v63 }
0x183e   :  { %v2902_v1 = vpop.permute.xlu0 %2901 }
0x1842   :  { %v3124_v10 = vpop.permute.xlu0 %3123 }
0x1843   :  { %v5941_v14 = vpop.eup %5940 }
0x1844   :  { %v2735_v0 = vmul.f32 %v5941_v14, %v5937_v58 }
0x1846   :  { %5641 = vmatmul.mubr.msk.f32.vlgmr.msra.gmra.mxu0 %vm350_vm4, %v2735_v0 }
0x1847   :  { %5649 = vmatpush3.msra.mxu0 %v2902_v1  ;;  %5650 = vmatprep.mubr.msk.f32.mxu0 %vm5987_vm3, %v5985_v16 }
0x1848   :  { %v5943_v2 = vpop.eup %5942  ;;  %5658 = vmatprep.subr.mxu0 %v5985_v16 }
0x1849   :  { %v2900_v3 = vmul.f32 %v5943_v2, %v5939_v60 }
0x184b   :  { %5651 = vmatmul.mubr.msk.f32.vlgmr.msra.gmra.mxu0 %vm350_vm4, %v2900_v3 }
0x184c   :  { %5660 = vmatprep.mubr.msk.f32.mxu0 %vm5987_vm3, %v5985_v16  ;;  %5659 = vmatpush3.msra.mxu0 %v6400_v4 }
0x184d   :  { %5668 = vmatprep.subr.mxu0 %v5985_v16 }
0x1906   :  { %v2808_v6 = vpop.f32.mrf.mxu0 }
0x1907   :  { %5661 = vmatmul.mubr.msk.f32.vlgmr.msra.gmra.mxu0 %vm350_vm4, %v2808_v6 }
0x1908   :  { %v5642_v7 = vpop.f32.mrf.mxu0  ;;  %5670 = vmatprep.mubr.msk.f32.mxu0 %vm5987_vm3, %v5985_v16 }
0x190b   :  { %v2973_v19 = vpop.f32.mrf.mxu0 }
0x190c   :  { %5656 = vmatmul.mubr.msk.f32.vlgmr.msra.gmra.mxu1 %vm350_vm4, %v2973_v19 }
0x190d   :  { %5664 = vmatpush3.xpose.msk.msra.mxu1 %vm350_vm4, %v3126_v8  ;;  %v5652_v9 = vpop.f32.mrf.mxu0  ;;  %5665 = vmatprep.mubr.msk.f32.mxu1 %vm5987_vm3, %v5985_v16 }
0x190e   :  { %5673 = vmatprep.subr.mxu1 %v5985_v16 }
0x1910   :  { %5666 = vmatmul.mubr.msk.f32.vlgmr.msra.gmra.mxu1 %vm350_vm4, %v3124_v10 }
0x1911   :  { %5675 = vmatprep.mubr.msk.f32.mxu1 %vm5987_vm3, %v5985_v16 }
0x19c7   :  { %v3119_v11 = vpop.f32.mrf.mxu0 }
0x19c9   :  { %v5662_v12 = vpop.f32.mrf.mxu0 }
0x19cc   :  { %v3046_v13 = vpop.f32.mrf.mxu1 }
0x19cd   :  { %v3120_v17 = vadd.f32 %v3119_v11, %v3046_v13 }
0x19ce   :  { %v5657_v18 = vpop.f32.mrf.mxu1 }
0x19d0   :  { %v3197_v20 = vpop.f32.mrf.mxu1 }
0x19d1   :  { %v3198_v24 = vadd.f32 %v6421_v23, %v3197_v20 }
0x19d2   :  { %v5667_v53 = vpop.f32.mrf.mxu1 }
0x19d3   :  { %v3201_v25 = vsel %vm350_vm4, %v3198_v24, -inf }
0x19d4   :  { %3202 = vmax.xlane.f32.xlu0 %v3201_v25 }
0x19ea   :  { %3212 = vrot.lane.b32.xlu0 %v6350_v39, %s5999_s13 }
0x19ee   :  { %3362 = vrot.lane.b32.xlu0 %v6357_v40, %s5998_s12  ;;  %v6442_v40 = vld [vmem:[%s6397_s29 + $0x10] sm:$0xff]  ;;  %s5176_s29 = sld [smem:[%s6689_s0 + %s6027_s23]]  }
0x19ef   :  { %5674 = vmatpush3.msra.mxu1 %v6442_v40 }
0x19f0   :  { %5683 = vmatprep.subr.mxu1 %v5985_v16 }
0x1a5d   :  { %v3203_v27 = vpop.xlane.xlu0 %3202 }
0x1a5e   :  { %v3204_v15 = vsub.f32 %v3198_v24, %v3203_v27 }
0x1a60   :  { %v3205_v28 = vmul.f32 1.442695, %v3204_v15 }
0x1a61   :  { %v3213_v29 = vpop.permute.xlu0 %3212 }
0x1a62   :  { %5944 = vpow2.f32 %v3205_v28  ;;  %5669 = vmatpush3.msra.mxu0 %v3213_v29 }
0x1a63   :  { %5678 = vmatprep.subr.mxu0 %v5985_v16 }
0x1a65   :  { %v3363_v38 = vpop.permute.xlu0 %3362 }
0x1a6f   :  { %v5945_v30 = vpop.eup %5944 }
0x1a70   :  { %v3207_v31 = vsel %vm350_vm4, %v5945_v30, 0.0 }
0x1a71   :  { %3208 = vadd.xlane.f32.xlu1 %v3207_v31 }
0x1a82   :  { %3364 = vrot.lane.b32.xlu1 %v6350_v39, %s5997_s11 }
0x1afa   :  { %v3209_v32 = vpop.xlane.xlu1 %3208 }
0x1afb   :  { %5946 = vrcp.f32 %v3209_v32 }
0x1afe   :  { %v3365_v21 = vpop.permute.xlu1 %3364 }
0x1b08   :  { %v5947_v34 = vpop.eup %5946 }
0x1b09   :  { %v3211_v35 = vmul.f32 %v5947_v34, %v5945_v30 }
0x1b0b   :  { %5671 = vmatmul.mubr.msk.f32.vlgmr.msra.gmra.mxu0 %vm350_vm4, %v3211_v35 }
0x1b0c   :  { %5679 = vmatpush3.xpose.msk.msra.mxu0 %vm350_vm4, %v3365_v21  ;;  %5680 = vmatprep.mubr.msk.f32.mxu0 %vm5987_vm3, %v5985_v16 }
0x1b0d   :  { %5688 = vmatprep.subr.mxu0 %v5985_v16 }
0x1b0f   :  { %5681 = vmatmul.mubr.msk.f32.vlgmr.msra.gmra.mxu0 %vm350_vm4, %v3363_v38 }
0x1b10   :  { %5690 = vmatprep.mubr.msk.f32.mxu0 %vm5987_vm3, %v5985_v16  ;;  %5689 = vmatpush3.msra.mxu0 %v6481_v61 }
0x1b11   :  { %5698 = vmatprep.subr.mxu0 %v5985_v16 }
0x1bcb   :  { %v3284_v41 = vpop.f32.mrf.mxu0 }
0x1bcc   :  { %5676 = vmatmul.mubr.msk.f32.vlgmr.msra.gmra.mxu1 %vm350_vm4, %v3284_v41 }
0x1bcd   :  { %v5672_v42 = vpop.f32.mrf.mxu0  ;;  %5685 = vmatprep.mubr.msk.f32.mxu1 %vm5987_vm3, %v5985_v16 }
0x1bcf   :  { %v3436_v36 = vpop.f32.mrf.mxu0 }
0x1bd0   :  { %v3437_v43 = vadd.f32 %v6421_v23, %v3436_v36 }
0x1bd1   :  { %v5682_v44 = vpop.f32.mrf.mxu0 }
0x1bd2   :  { %v3440_v46 = vsel %vm350_vm4, %v3437_v43, -inf }
0x1bd3   :  { %3441 = vmax.xlane.f32.xlu0 %v3440_v46 }
0x1be9   :  { %3451 = vrot.lane.b32.xlu0 %v6350_v39, %s6000_s14 }
0x1bed   :  { %3777 = vrot.lane.b32.xlu0 %v6348_v37, %s5990_s28  ;;  %s6021_s28 = smov 27  }
0x1bf1   :  { %3775 = vrot.lane.b32.xlu0 %v6456_v47, %s5989_s27  ;;  %s5173_s27 = sld [smem:[%s6689_s0 + %s6020_s25]]  }
0x1c5c   :  { %v3442_v48 = vpop.xlane.xlu0 %3441 }
0x1c5d   :  { %v3443_v49 = vsub.f32 %v3437_v43, %v3442_v48 }
0x1c5f   :  { %v3444_v45 = vmul.f32 1.442695, %v3443_v49 }
0x1c60   :  { %v3452_v50 = vpop.permute.xlu0 %3451 }
0x1c61   :  { %5948 = vpow2.f32 %v3444_v45  ;;  %5684 = vmatpush3.msra.mxu1 %v3452_v50 }
0x1c62   :  { %5693 = vmatprep.subr.mxu1 %v5985_v16 }
0x1c64   :  { %v3778_v59 = vpop.permute.xlu0 %3777 }
0x1c68   :  { %v3776_v60 = vpop.permute.xlu0 %3775 }
0x1c6e   :  { %v5949_v51 = vpop.eup %5948 }
0x1c6f   :  { %v3446_v39 = vsel %vm350_vm4, %v5949_v51, 0.0 }
0x1c70   :  { %3447 = vadd.xlane.f32.xlu1 %v3446_v39 }
0x1c81   :  { %3611 = vrot.lane.b32.xlu1 %v6348_v37, %s5988_s26  ;;  %s6013_s26 = smov 20  }
0x1c82   :  { %s5164_s2 = sld [smem:[%s6689_s0 + %s6013_s26]]   ;;  %s6028_s26 = smov 35  }
0x1c8c   :  { %v3357_v52 = vpop.f32.mrf.mxu1 }
0x1c8d   :  { %v3361_v54 = vadd.f32 %v3357_v52, %v3120_v17 }
0x1c8e   :  { %v5677_v55 = vpop.f32.mrf.mxu1 }
0x1cf9   :  { %v3448_v56 = vpop.xlane.xlu1 %3447 }
0x1cfa   :  { %5950 = vrcp.f32 %v3448_v56 }
0x1cfd   :  { %v3612_v58 = vpop.permute.xlu1 %3611 }
0x1d07   :  { %v5951_v57 = vpop.eup %5950 }
0x1d08   :  { %v3450_v26 = vmul.f32 %v5951_v57, %v5949_v51 }
0x1d0a   :  { %5686 = vmatmul.mubr.msk.f32.vlgmr.msra.gmra.mxu1 %vm350_vm4, %v3450_v26 }
0x1d0b   :  { %5694 = vmatpush3.xpose.msk.msra.mxu1 %vm350_vm4, %v3612_v58  ;;  %5695 = vmatprep.mubr.msk.f32.mxu1 %vm5987_vm3, %v5985_v16 }
0x1d0c   :  { %5703 = vmatprep.subr.mxu1 %v5985_v16 }
0x1d0e   :  { %5696 = vmatmul.mubr.msk.f32.vlgmr.msra.gmra.mxu1 %vm350_vm4, %v6456_v47 }
0x1d0f   :  { %5704 = vmatpush3.xpose.msk.msra.mxu1 %vm350_vm4, %v3778_v59  ;;  %5705 = vmatprep.mubr.msk.f32.mxu1 %vm5987_vm3, %v5985_v16 }
0x1d10   :  { %5713 = vmatprep.subr.mxu1 %v5985_v16 }
0x1d12   :  { %5706 = vmatmul.mubr.msk.f32.vlgmr.msra.gmra.mxu1 %vm350_vm4, %v3776_v60  ;;  %v5249_v60 = vld [vmem:[%s5164_s2] ss:$0 sm:$0xff]  ;;  %s5179_s2 = sld [smem:[%s6689_s0 + %s6028_s26]]  }
0x1d13   :  { %5714 = vmatpush3.msra.mxu1 %v6404_v5  ;;  %5715 = vmatprep.mubr.msk.f32.mxu1 %vm5987_vm3, %v5985_v16 }
0x1d14   :  { %5723 = vmatprep.subr.mxu1 %v5985_v16 }
0x1dca   :  { %v3523_v62 = vpop.f32.mrf.mxu1 }
0x1dcb   :  { %5691 = vmatmul.mubr.msk.f32.vlgmr.msra.gmra.mxu0 %vm350_vm4, %v3523_v62 }
0x1dcc   :  { %v5687_v63 = vpop.f32.mrf.mxu1  ;;  %5700 = vmatprep.mubr.msk.f32.mxu0 %vm5987_vm3, %v5985_v16 }
0x1dce   :  { %v3684_v14 = vpop.f32.mrf.mxu1 }
0x1dcf   :  { %v3685_v0 = vadd.f32 %v6421_v23, %v3684_v14 }
0x1dd0   :  { %v5697_v1 = vpop.f32.mrf.mxu1 }
0x1dd1   :  { %v3688_v2 = vsel %vm350_vm4, %v3685_v0, -inf }
0x1dd2   :  { %3689 = vmax.xlane.f32.xlu0 %v3688_v2  ;;  %v3849_v3 = vpop.f32.mrf.mxu1 }
0x1dd3   :  { %v3850_v5 = vadd.f32 %v6421_v23, %v3849_v3 }
0x1dd4   :  { %v5707_v6 = vpop.f32.mrf.mxu1 }
0x1dd5   :  { %v3853_v7 = vsel %vm350_vm4, %v3850_v5, -inf }
0x1dd6   :  { %3854 = vmax.xlane.f32.xlu1 %v3853_v7 }
0x1de7   :  { %3699 = vrot.lane.b32.xlu1 %v6348_v37, %s5993_s4  ;;  %s5171_s4 = sld [smem:[%s6689_s0 + %s6021_s28]]  }
0x1deb   :  { %4088 = vrot.lane.b32.xlu1 %v6348_v37, %s5994_s5  ;;  %s6022_s5 = smov 28  }
0x1def   :  { %4086 = vrot.lane.b32.xlu1 %v6456_v47, %s5995_s6 }
0x1e5b   :  { %v3690_v19 = vpop.xlane.xlu0 %3689 }
0x1e5c   :  { %v3691_v8 = vsub.f32 %v3685_v0, %v3690_v19 }
0x1e5e   :  { %v3692_v9 = vmul.f32 1.442695, %v3691_v8 }
0x1e5f   :  { %v3855_v10 = vpop.xlane.xlu1 %3854 }
0x1e60   :  { %5952 = vpow2.f32 %v3692_v9  ;;  %v3856_v11 = vsub.f32 %v3850_v5, %v3855_v10 }
0x1e62   :  { %v3857_v12 = vmul.f32 1.442695, %v3856_v11 }
0x1e63   :  { %v3700_v13 = vpop.permute.xlu1 %3699 }
0x1e64   :  { %5954 = vpow2.f32 %v3857_v12  ;;  %5699 = vmatpush3.msra.mxu0 %v3700_v13 }
0x1e65   :  { %5708 = vmatprep.subr.mxu0 %v5985_v16 }
0x1e67   :  { %v4089_v21 = vpop.permute.xlu1 %4088 }
0x1e6d   :  { %v5953_v17 = vpop.eup %5952 }
0x1e6e   :  { %v3694_v18 = vsel %vm350_vm4, %v5953_v17, 0.0 }
0x1e6f   :  { %3695 = vadd.xlane.f32.xlu0 %v3694_v18 }
0x1e71   :  { %v5955_v20 = vpop.eup %5954 }
0x1e72   :  { %v3859_v24 = vsel %vm350_vm4, %v5955_v20, 0.0 }
0x1e73   :  { %3860 = vadd.xlane.f32.xlu0 %v3859_v24 }
0x1e89   :  { %3864 = vrot.lane.b32.xlu0 %v6348_v37, %s5992_s3  ;;  %s6014_s3 = smov 21  }
0x1e8a   :  { %s5165_s6 = sld [smem:[%s6689_s0 + %s6014_s3]]  }
0x1e8b   :  { %v3596_v53 = vpop.f32.mrf.mxu0 }
0x1e8c   :  { %v6503_v25 = vadd.f32 %v3596_v53, %v3361_v54 }
0x1e8d   :  { %v5692_v27 = vpop.f32.mrf.mxu0 }
0x1e8e   :  { %v3608_v14 = vadd.f32 %v5249_v60, %v6503_v25 }
0x1e90   :  { %v4565_v3 = vadd.f32 %v3608_v14, %v6335_v33  ;;  %v4706_v14 = vld [vmem:[%s6582_s16 + $0x8] sm:$0xff] }
0x1e92   :  { %v4569_v5 = vsel %vm260_vm2, %v4565_v3, 0.0 }
0x1ef8   :  { %v3696_v15 = vpop.xlane.xlu0 %3695 }
0x1ef9   :  { %5956 = vrcp.f32 %v3696_v15 }
0x1efc   :  { %v3861_v28 = vpop.xlane.xlu0 %3860 }
0x1efd   :  { %5958 = vrcp.f32 %v3861_v28 }
0x1f00   :  { %v3865_v31 = vpop.permute.xlu0 %3864 }
0x1f06   :  { %v5957_v29 = vpop.eup %5956 }
0x1f07   :  { %v3698_v30 = vmul.f32 %v5957_v29, %v5953_v17 }
0x1f09   :  { %5701 = vmatmul.mubr.msk.f32.vlgmr.msra.gmra.mxu0 %vm350_vm4, %v3698_v30 }
0x1f0a   :  { %v5959_v32 = vpop.eup %5958  ;;  %5709 = vmatpush3.msra.mxu0 %v3865_v31  ;;  %5710 = vmatprep.mubr.msk.f32.mxu0 %vm5987_vm3, %v5985_v16 }
0x1f0b   :  { %v3863_v34 = vmul.f32 %v5959_v32, %v5955_v20  ;;  %5718 = vmatprep.subr.mxu0 %v5985_v16 }
0x1f0d   :  { %5711 = vmatmul.mubr.msk.f32.vlgmr.msra.gmra.mxu0 %vm350_vm4, %v3863_v34 }
0x1f0e   :  { %5719 = vmatpush3.msra.mxu0 %v6400_v4  ;;  %5720 = vmatprep.mubr.msk.f32.mxu0 %vm5987_vm3, %v5985_v16  ;;  %v4087_v4 = vpop.permute.xlu1 %4086 }
0x1f0f   :  { %5728 = vmatprep.subr.mxu0 %v5985_v16 }
0x1fc9   :  { %v3771_v35 = vpop.f32.mrf.mxu0 }
0x1fca   :  { %5721 = vmatmul.mubr.msk.f32.vlgmr.msra.gmra.mxu0 %vm350_vm4, %v3771_v35 }
0x1fcb   :  { %v5702_v38 = vpop.f32.mrf.mxu0  ;;  %5730 = vmatprep.mubr.msk.f32.mxu0 %vm5987_vm3, %v5985_v16 }
0x1fcd   :  { %v3936_v41 = vpop.f32.mrf.mxu0 }
0x1fce   :  { %5716 = vmatmul.mubr.msk.f32.vlgmr.msra.gmra.mxu1 %vm350_vm4, %v3936_v41 }
0x1fcf   :  { %5724 = vmatpush3.xpose.msk.msra.mxu1 %vm350_vm4, %v4089_v21  ;;  %v5712_v42 = vpop.f32.mrf.mxu0  ;;  %5725 = vmatprep.mubr.msk.f32.mxu1 %vm5987_vm3, %v5985_v16 }
0x1fd0   :  { %5733 = vmatprep.subr.mxu1 %v5985_v16 }
0x1fd2   :  { %5726 = vmatmul.mubr.msk.f32.vlgmr.msra.gmra.mxu1 %vm350_vm4, %v4087_v4 }
0x1fd3   :  { %5734 = vmatpush3.msra.mxu1 %v6442_v40  ;;  %5735 = vmatprep.mubr.msk.f32.mxu1 %vm5987_vm3, %v5985_v16 }
0x1fd4   :  { %5743 = vmatprep.subr.mxu1 %v5985_v16 }
0x208a   :  { %v4082_v36 = vpop.f32.mrf.mxu0 }
0x208c   :  { %v5722_v43 = vpop.f32.mrf.mxu0 }
0x208d   :  { %v5266_v43 = vld [vmem:[%s5165_s6] ss:$0 sm:$0xff] }
0x208e   :  { %v4009_v44 = vpop.f32.mrf.mxu1 }
0x208f   :  { %v4083_v46 = vadd.f32 %v4082_v36, %v4009_v44 }
0x2090   :  { %v5717_v48 = vpop.f32.mrf.mxu1 }
0x2092   :  { %v4160_v49 = vpop.f32.mrf.mxu1 }
0x2093   :  { %v4161_v45 = vadd.f32 %v6421_v23, %v4160_v49 }
0x2094   :  { %v5727_v50 = vpop.f32.mrf.mxu1 }
0x2095   :  { %v4164_v51 = vsel %vm350_vm4, %v4161_v45, -inf  ;;  %v4613_v50 = vld [vmem:[%s5167_s8 + $0x10] sm:$0xff] }
0x2096   :  { %4165 = vmax.xlane.f32.xlu0 %v4164_v51  ;;  %v4612_v51 = vld [vmem:[%s5167_s8 + $0x8] sm:$0xff] }
0x20ac   :  { %4175 = vrot.lane.b32.xlu0 %v6348_v37, %s5999_s13  ;;  %s6023_s13 = smov 31  }
0x20ad   :  { %s6630_s1 = sld [smem:[%s6689_s0 + %s6023_s13]]  }
0x20b0   :  { %4325 = vrot.lane.b32.xlu0 %v6456_v47, %s5998_s12  ;;  %s5172_s12 = sld [smem:[%s6689_s0 + %s6022_s5]]  }
0x211f   :  { %v4166_v40 = vpop.xlane.xlu0 %4165 }
0x2120   :  { %v4167_v39 = vsub.f32 %v4161_v45, %v4166_v40  ;;  %v4614_v45 = vld [vmem:[%s5167_s8 + $0x18] sm:$0xff]  ;;  %v4611_v40 = vld [vmem:[%s5167_s8] sm:$0xff] }
0x2122   :  { %v4168_v52 = vmul.f32 1.442695, %v4167_v39  ;;  %v4712_v39 = vld [vmem:[%s6582_s16 + $0x38] sm:$0xff] }
0x2123   :  { %v4176_v54 = vpop.permute.xlu0 %4175 }
0x2124   :  { %5960 = vpow2.f32 %v4168_v52  ;;  %5729 = vmatpush3.msra.mxu0 %v4176_v54  ;;  %v4711_v52 = vld [vmem:[%s6582_s16 + $0x30] sm:$0xff]  ;;  %v4710_v54 = vld [vmem:[%s6582_s16 + $0x28] sm:$0xff] }
0x2125   :  { %5738 = vmatprep.subr.mxu0 %v5985_v16 }
0x2127   :  { %v4326_v59 = vpop.permute.xlu0 %4325 }
0x2131   :  { %v5961_v55 = vpop.eup %5960 }
0x2132   :  { %v4170_v56 = vsel %vm350_vm4, %v5961_v55, 0.0 }
0x2133   :  { %4171 = vadd.xlane.f32.xlu1 %v4170_v56 }
0x2144   :  { %4327 = vrot.lane.b32.xlu1 %v6348_v37, %s5997_s11  ;;  %s6015_s11 = smov 22  }
0x21bc   :  { %v4172_v57 = vpop.xlane.xlu1 %4171 }
0x21bd   :  { %5962 = vrcp.f32 %v4172_v57 }
0x21c0   :  { %v4328_v47 = vpop.permute.xlu1 %4327 }
0x21ca   :  { %v5963_v26 = vpop.eup %5962 }
0x21cb   :  { %v4174_v58 = vmul.f32 %v5963_v26, %v5961_v55  ;;  %v4709_v55 = vld [vmem:[%s6582_s16 + $0x20] sm:$0xff] }
0x21cd   :  { %5731 = vmatmul.mubr.msk.f32.vlgmr.msra.gmra.mxu0 %vm350_vm4, %v4174_v58 }
0x21ce   :  { %5739 = vmatpush3.xpose.msk.msra.mxu0 %vm350_vm4, %v4328_v47  ;;  %5740 = vmatprep.mubr.msk.f32.mxu0 %vm5987_vm3, %v5985_v16 }
0x21cf   :  { %5748 = vmatprep.subr.mxu0 %v5985_v16 }
0x21d1   :  { %5741 = vmatmul.mubr.msk.f32.vlgmr.msra.gmra.mxu0 %vm350_vm4, %v4326_v59 }
0x21d2   :  { %5749 = vmatpush3.msra.mxu0 %v6481_v61  ;;  %5750 = vmatprep.mubr.msk.f32.mxu0 %vm5987_vm3, %v5985_v16 }
0x21d3   :  { %5764 = vmatprep.subr.mxu0 %v4712_v39 }
0x228d   :  { %v4247_v62 = vpop.f32.mrf.mxu0 }
0x228e   :  { %5736 = vmatmul.mubr.msk.f32.vlgmr.msra.gmra.mxu1 %vm350_vm4, %v4247_v62  ;;  %v4708_v62 = vld [vmem:[%s6582_s16 + $0x18] sm:$0xff] }
0x228f   :  { %v5732_v63 = vpop.f32.mrf.mxu0  ;;  %5745 = vmatprep.mubr.msk.f32.mxu1 %vm5987_vm3, %v5985_v16 }
0x2290   :  { %v4707_v63 = vld [vmem:[%s6582_s16 + $0x10] sm:$0xff] }
0x2291   :  { %v4399_v0 = vpop.f32.mrf.mxu0 }
0x2292   :  { %v4400_v61 = vadd.f32 %v6421_v23, %v4399_v0  ;;  %v4705_v0 = vld [vmem:[%s6582_s16] sm:$0xff] }
0x2293   :  { %v5742_v1 = vpop.f32.mrf.mxu0 }
0x2294   :  { %v4403_v2 = vsel %vm350_vm4, %v4400_v61, -inf }
0x2295   :  { %4404 = vmax.xlane.f32.xlu1 %v4403_v2 }
0x2299   :  { %4570 = vadd.xlane.f32.xlu1 %v4569_v5 }
0x231e   :  { %v4405_v6 = vpop.xlane.xlu1 %4404 }
0x231f   :  { %v4406_v7 = vsub.f32 %v4400_v61, %v4405_v6  ;;  %v5268_v61 = vld [vmem:[%s5168_s20] ss:$0 sm:$0xff] }
0x2321   :  { %v4407_v19 = vmul.f32 1.442695, %v4406_v7 }
0x2322   :  { %v4571_v24 = vpop.xlane.xlu1 %4570 }
0x2323   :  { %5964 = vpow2.f32 %v4407_v19  ;;  %v4575_v53 = vmul.f32 0.03125, %v4571_v24 }
0x2325   :  { %v4577_v15 = vsub.f32 %v4565_v3, %v4575_v53 }
0x2327   :  { %v4579_v31 = vmul.f32 %v4577_v15, %v4577_v15 }
0x2329   :  { %v4581_v32 = vsel %vm260_vm2, %v4579_v31, 0.0  ;;  %v4867_v31 = vld [vmem:[%s5173_s27 + $0x8] sm:$0xff] }
0x2330   :  { %v5965_v8 = vpop.eup %5964 }
0x2331   :  { %v4409_v9 = vsel %vm350_vm4, %v5965_v8, 0.0 }
0x2332   :  { %4410 = vadd.xlane.f32.xlu0 %v4409_v9 }
0x2348   :  { %4414 = vrot.lane.b32.xlu0 %v6348_v37, %s6000_s14  ;;  %s5166_s14 = sld [smem:[%s6689_s0 + %s6015_s11]]  }
0x234e   :  { %v4320_v23 = vpop.f32.mrf.mxu1 }
0x234f   :  { %v4324_v10 = vadd.f32 %v4320_v23, %v4083_v46  ;;  %v5267_v46 = vld [vmem:[%s5166_s14] ss:$0 sm:$0xff] }
0x2350   :  { %v5737_v11 = vpop.f32.mrf.mxu1 }
0x23bb   :  { %v4411_v12 = vpop.xlane.xlu0 %4410 }
0x23bc   :  { %5966 = vrcp.f32 %v4411_v12 }
0x23bf   :  { %v4415_v33 = vpop.permute.xlu0 %4414 }
0x23c0   :  { %5744 = vmatpush3.msra.mxu1 %v4415_v33 }
0x23c1   :  { %5753 = vmatprep.subr.mxu1 %v4614_v45 }
0x23c9   :  { %v5967_v13 = vpop.eup %5966 }
0x23ca   :  { %v4413_v17 = vmul.f32 %v5967_v13, %v5965_v8  ;;  %v5271_v8 = vld [vmem:[%s5170_s24] ss:$0 sm:$0xff] }
0x23cc   :  { %5746 = vmatmul.mubr.msk.f32.vlgmr.msra.gmra.mxu1 %vm350_vm4, %v4413_v17 }
0x23cd   :  { %5754 = vmatpush3.msra.mxu1 %v4614_v45 }
0x23ce   :  { %5755 = vmatprep.subr.mxu1 %v4613_v50 }
0x23cf   :  { %5756 = vmatpush3.msra.mxu1 %v4613_v50 }
0x23d0   :  { %5757 = vmatprep.subr.mxu1 %v4612_v51 }
0x23d1   :  { %5758 = vmatpush3.msra.mxu1 %v4612_v51 }
0x23d2   :  { %5759 = vmatprep.subr.mxu1 %v4611_v40 }
0x23d3   :  { %5760 = vmatpush3.msra.mxu1 %v4611_v40 }
0x23d4   :  { %5783 = vmatprep.subr.mxu1 %v5985_v16 }
0x248c   :  { %v4486_v18 = vpop.f32.mrf.mxu1 }
0x248d   :  { %5751 = vmatmul.mubr.msk.f32.vlgmr.msra.gmra.mxu0 %vm350_vm4, %v4486_v18 }
0x248e   :  { %v5747_v20 = vpop.f32.mrf.mxu1  ;;  %5765 = vmatpush3.msra.mxu0 %v4712_v39 }
0x248f   :  { %5766 = vmatprep.subr.mxu0 %v4711_v52 }
0x2490   :  { %5767 = vmatpush3.msra.mxu0 %v4711_v52 }
0x2491   :  { %5768 = vmatprep.subr.mxu0 %v4710_v54 }
0x2492   :  { %5769 = vmatpush3.msra.mxu0 %v4710_v54 }
0x2493   :  { %5770 = vmatprep.subr.mxu0 %v4709_v55 }
0x2494   :  { %5771 = vmatpush3.msra.mxu0 %v4709_v55 }
0x2495   :  { %5772 = vmatprep.subr.mxu0 %v4708_v62 }
0x2496   :  { %5773 = vmatpush3.msra.mxu0 %v4708_v62 }
0x2497   :  { %5774 = vmatprep.subr.mxu0 %v4707_v63 }
0x2498   :  { %5775 = vmatpush3.msra.mxu0 %v4707_v63 }
0x2499   :  { %5776 = vmatprep.subr.mxu0 %v4706_v14 }
0x249a   :  { %5777 = vmatpush3.msra.mxu0 %v4706_v14 }
0x249b   :  { %5778 = vmatprep.subr.mxu0 %v4705_v0 }
0x249c   :  { %5779 = vmatpush3.msra.mxu0 %v4705_v0  ;;  %v4966_v0 = vld [vmem:[%s6630_s1 + $0x78] sm:$0xff] }
0x249d   :  { %5829 = vmatprep.subr.mxu0 %v5985_v16 }
0x254d   :  { %v4559_v25 = vpop.f32.mrf.mxu0 }
0x254e   :  { %v4563_v27 = vadd.f32 %v4559_v25, %v4324_v10 }
0x254f   :  { %v5752_v37 = vpop.f32.mrf.mxu0 }
0x2550   :  { %v4564_v28 = vadd.f32 %v5249_v60, %v4563_v27 }
0x2552   :  { %v4566_v29 = vadd.f32 %v4564_v28, %v6339_v22 }
0x2554   :  { %v4572_v30 = vsel %vm260_vm2, %v4566_v29, 0.0 }
0x2555   :  { %4573 = vadd.xlane.f32.xlu1 %v4572_v30  ;;  %v4868_v30 = vld [vmem:[%s5173_s27 + $0x10] sm:$0xff] }
0x2559   :  { %4582 = vadd.xlane.f32.xlu1 %v4581_v32  ;;  %v4866_v32 = vld [vmem:[%s5173_s27] sm:$0xff] }
0x25de   :  { %v4574_v34 = vpop.xlane.xlu1 %4573 }
0x25df   :  { %v4576_v35 = vmul.f32 0.03125, %v4574_v34 }
0x25e1   :  { %v4578_v21 = vsub.f32 %v4566_v29, %v4576_v35  ;;  %v4869_v29 = vld [vmem:[%s5173_s27 + $0x18] sm:$0xff] }
0x25e2   :  { %v4583_v38 = vpop.xlane.xlu1 %4582 }
0x25e3   :  { %v4587_v41 = vmul.f32 0.03125, %v4583_v38  ;;  %v4580_v42 = vmul.f32 %v4578_v21, %v4578_v21 }
0x25e5   :  { %v4589_v4 = vadd.f32 1e-05, %v4587_v41  ;;  %v4584_v36 = vsel %vm260_vm2, %v4580_v42, 0.0 }
0x25e6   :  { %4585 = vadd.xlane.f32.xlu1 %v4584_v36  ;;  %v5274_v36 = vld [vmem:[%s5171_s4] ss:$0 sm:$0xff] }
0x25e7   :  { %5968 = vrsqrt.f32 %v4589_v4 }
0x25f4   :  { %v5969_v22 = vpop.eup %5968 }
0x25f5   :  { %v4593_v44 = vmul.f32 %v5969_v22, %v4577_v15 }
0x25f7   :  { %v4601_v48 = vmul.f32 %v5266_v43, %v4593_v44 }
0x25f9   :  { %v6572_v49 = vadd.f32 %v5267_v46, %v4601_v48 }
0x25fb   :  { %5761 = vmatprep.mubr.msk.f32.mxu1 %vm260_vm2, %v6572_v49 }
0x266f   :  { %v4586_v56 = vpop.xlane.xlu1 %4585 }
0x2670   :  { %v4588_v57 = vmul.f32 0.03125, %v4586_v56 }
0x2672   :  { %v4590_v26 = vadd.f32 1e-05, %v4588_v57 }
0x2674   :  { %5970 = vrsqrt.f32 %v4590_v26 }
0x2681   :  { %v5971_v58 = vpop.eup %5970 }
0x2682   :  { %v4594_v47 = vmul.f32 %v5971_v58, %v4578_v21 }
0x2684   :  { %v4602_v59 = vmul.f32 %v5266_v43, %v4594_v47  ;;  %v5275_v43 = vld [vmem:[%s5172_s12] ss:$0 sm:$0xff] }
0x2686   :  { %v4610_v60 = vadd.f32 %v5267_v46, %v4602_v59 }
0x2688   :  { %5762 = vmatmul.mubr.msk.f32.vlgmr.msra.gmra.mxu1 %vm260_vm2, %v4610_v60 }
0x2689   :  { %5791 = vmatprep.mubr.msk.f32.mxu1 %vm5987_vm3, %v5985_v16  ;;  %5784 = vmatpush3.msra.mxu1 %v4869_v29  ;;  %v5047_v29 = vld [vmem:[%s5177_s10 + $0x10] sm:$0xff] }
0x268a   :  { %5785 = vmatprep.subr.mxu1 %v5985_v16 }
0x268b   :  { %5786 = vmatpush3.msra.mxu1 %v4868_v30  ;;  %v5046_v30 = vld [vmem:[%s5177_s10 + $0x8] sm:$0xff] }
0x268c   :  { %5787 = vmatprep.subr.mxu1 %v5985_v16 }
0x268d   :  { %5788 = vmatpush3.msra.mxu1 %v4867_v31  ;;  %v5045_v31 = vld [vmem:[%s5177_s10] sm:$0xff] }
0x268e   :  { %5789 = vmatprep.subr.mxu1 %v5985_v16 }
0x268f   :  { %5790 = vmatpush3.msra.mxu1 %v4866_v32  ;;  %v76_v32 = vstv %s5178_s22 }
0x2690   :  { %5794 = vmatprep.subr.mxu1 %v5985_v16  ;;  %77 = vst [vmem:[#allocation2] sm:$0x1] %v76_v32 }
0x2748   :  { %v5763_v1 = vpop.f32.mrf.mxu1 }
0x2749   :  { %v4700_v2 = vadd.f32 %v5763_v1, %v5268_v61  ;;  %v4965_v1 = vld [vmem:[%s6630_s1 + $0x70] sm:$0xff] }
0x274a   :  { %v4694_v3 = vpop.f32.mrf.mxu1 }
0x274b   :  { %v4695_v5 = vadd.f32 %v5268_v61, %v4694_v3  ;;  %v4704_v7 = vmax.f32 %v4700_v2, 0.0  ;;  %v4964_v2 = vld [vmem:[%s6630_s1 + $0x68] sm:$0xff]  ;;  %v4963_v3 = vld [vmem:[%s6630_s1 + $0x60] sm:$0xff] }
0x274d   :  { %v4703_v6 = vmax.f32 %v4695_v5, 0.0  ;;  %v4962_v5 = vld [vmem:[%s6630_s1 + $0x58] sm:$0xff] }
0x274f   :  { %5780 = vmatprep.mubr.msk.f32.mxu0 %vm2422_vm5, %v4703_v6  ;;  %v4961_v6 = vld [vmem:[%s6630_s1 + $0x50] sm:$0xff] }
0x2750   :  { %5781 = vmatmul.mubr.msk.f32.vlgmr.msra.gmra.mxu0 %vm2422_vm5, %v4704_v7  ;;  %v4960_v7 = vld [vmem:[%s6630_s1 + $0x48] sm:$0xff] }
0x2751   :  { %5845 = vmatprep.mubr.msk.f32.mxu0 %vm5987_vm3, %v5985_v16 }
0x2810   :  { %v5782_v19 = vpop.f32.mrf.mxu0 }
0x2811   :  { %v4798_v23 = vadd.f32 %v5782_v19, %v5271_v8  ;;  %v4959_v19 = vld [vmem:[%s6630_s1 + $0x40] sm:$0xff] }
0x2812   :  { %v4792_v9 = vpop.f32.mrf.mxu0 }
0x2813   :  { %v4793_v10 = vadd.f32 %v5271_v8, %v4792_v9  ;;  %v4802_v33 = vadd.f32 %v4798_v23, %v4610_v60  ;;  %v4958_v8 = vld [vmem:[%s6630_s1 + $0x38] sm:$0xff]  ;;  %v4957_v9 = vld [vmem:[%s6630_s1 + $0x30] sm:$0xff]  ;;  %v4956_v23 = vld [vmem:[%s6630_s1 + $0x28] sm:$0xff] }
0x2815   :  { %v4801_v11 = vadd.f32 %v4793_v10, %v6572_v49  ;;  %v4808_v13 = vsel %vm260_vm2, %v4802_v33, 0.0  ;;  %v4955_v10 = vld [vmem:[%s6630_s1 + $0x20] sm:$0xff] }
0x2817   :  { %v4805_v12 = vsel %vm260_vm2, %v4801_v11, 0.0 }
0x2818   :  { %4806 = vadd.xlane.f32.xlu1 %v4805_v12  ;;  %v4953_v12 = vld [vmem:[%s6630_s1 + $0x10] sm:$0xff] }
0x281c   :  { %4809 = vadd.xlane.f32.xlu1 %v4808_v13  ;;  %v4951_v13 = vld [vmem:[%s6630_s1] sm:$0xff] }
0x28a1   :  { %v4807_v17 = vpop.xlane.xlu1 %4806 }
0x28a2   :  { %v4811_v18 = vmul.f32 0.03125, %v4807_v17  ;;  %v5052_v17 = vld [vmem:[%s5177_s10 + $0x38] sm:$0xff] }
0x28a3   :  { %5830 = vmatpush3.msra.mxu0 %v5052_v17 }
0x28a4   :  { %v4813_v20 = vsub.f32 %v4801_v11, %v4811_v18  ;;  %v4954_v11 = vld [vmem:[%s6630_s1 + $0x18] sm:$0xff]  ;;  %v5051_v18 = vld [vmem:[%s5177_s10 + $0x30] sm:$0xff]  ;;  %5831 = vmatprep.subr.mxu0 %v5985_v16 }
0x28a5   :  { %v4810_v24 = vpop.xlane.xlu1 %4809  ;;  %5832 = vmatpush3.msra.mxu0 %v5051_v18 }
0x28a6   :  { %v4812_v53 = vmul.f32 0.03125, %v4810_v24  ;;  %v4815_v25 = vmul.f32 %v4813_v20, %v4813_v20  ;;  %5833 = vmatprep.subr.mxu0 %v5985_v16  ;;  %v5049_v24 = vld [vmem:[%s5177_s10 + $0x20] sm:$0xff] }
0x28a8   :  { %v4814_v27 = vsub.f32 %v4802_v33, %v4812_v53  ;;  %v4817_v37 = vsel %vm260_vm2, %v4815_v25, 0.0  ;;  %v4952_v33 = vld [vmem:[%s6630_s1 + $0x8] sm:$0xff]  ;;  %v5048_v53 = vld [vmem:[%s5177_s10 + $0x18] sm:$0xff]  ;;  %v5276_v25 = vld [vmem:[%s5174_s18] ss:$0 sm:$0xff] }
0x28a9   :  { %4818 = vadd.xlane.f32.xlu0 %v4817_v37 }
0x28aa   :  { %v4816_v15 = vmul.f32 %v4814_v27, %v4814_v27 }
0x28ac   :  { %v4820_v28 = vsel %vm260_vm2, %v4816_v15, 0.0 }
0x28ad   :  { %4821 = vadd.xlane.f32.xlu1 %v4820_v28 }
0x2932   :  { %v4819_v34 = vpop.xlane.xlu0 %4818 }
0x2933   :  { %v4823_v35 = vmul.f32 0.03125, %v4819_v34  ;;  %v5278_v34 = vld [vmem:[%s5176_s29] ss:$0 sm:$0xff] }
0x2935   :  { %v4825_v21 = vadd.f32 1e-05, %v4823_v35 }
0x2936   :  { %v4822_v38 = vpop.xlane.xlu1 %4821 }
0x2937   :  { %5972 = vrsqrt.f32 %v4825_v21  ;;  %v4824_v41 = vmul.f32 0.03125, %v4822_v38 }
0x2939   :  { %v4826_v42 = vadd.f32 1e-05, %v4824_v41 }
0x293b   :  { %5974 = vrsqrt.f32 %v4826_v42 }
0x2944   :  { %v5973_v4 = vpop.eup %5972 }
0x2945   :  { %v4829_v22 = vmul.f32 %v5973_v4, %v4813_v20  ;;  %v5050_v20 = vld [vmem:[%s5177_s10 + $0x28] sm:$0xff] }
0x2946   :  { %5834 = vmatpush3.msra.mxu0 %v5050_v20 }
0x2947   :  { %v4837_v44 = vmul.f32 %v5274_v36, %v4829_v22  ;;  %5835 = vmatprep.subr.mxu0 %v5985_v16 }
0x2948   :  { %v5975_v46 = vpop.eup %5974  ;;  %5836 = vmatpush3.msra.mxu0 %v5049_v24 }
0x2949   :  { %v4830_v48 = vmul.f32 %v5975_v46, %v4814_v27  ;;  %v4845_v49 = vadd.f32 %v5275_v43, %v4837_v44  ;;  %5837 = vmatprep.subr.mxu0 %v5985_v16 }
0x294a   :  { %5838 = vmatpush3.msra.mxu0 %v5048_v53 }
0x294b   :  { %v4838_v45 = vmul.f32 %v5274_v36, %v4830_v48  ;;  %v4847_v50 = vsel %vm260_vm2, %v4845_v49, 0.0  ;;  %5839 = vmatprep.subr.mxu0 %v5985_v16 }
0x294c   :  { %v4848_v51 = vrot.slane %v4847_v50, 4  ;;  %5840 = vmatpush3.msra.mxu0 %v5047_v29 }
0x294d   :  { %v4846_v40 = vadd.f32 %v5275_v43, %v4838_v45  ;;  %5841 = vmatprep.subr.mxu0 %v5985_v16 }
0x294e   :  { %v4849_v39 = vadd.f32 %v4848_v51, %v4847_v50  ;;  %5842 = vmatpush3.msra.mxu0 %v5046_v30 }
0x294f   :  { %v4856_v52 = vsel %vm260_vm2, %v4846_v40, 0.0  ;;  %5843 = vmatprep.subr.mxu0 %v5985_v16 }
0x2950   :  { %v4850_v54 = vrot.slane %v4849_v39, 2  ;;  %v4857_v55 = vrot.slane %v4856_v52, 4  ;;  %5844 = vmatpush3.msra.mxu0 %v5045_v31 }
0x2952   :  { %v4851_v56 = vadd.f32 %v4850_v54, %v4849_v39  ;;  %v4858_v57 = vadd.f32 %v4857_v55, %v4856_v52 }
0x2954   :  { %v4852_v26 = vrot.slane %v4851_v56, 1  ;;  %v4859_v58 = vrot.slane %v4858_v57, 2 }
0x2956   :  { %v4860_v47 = vadd.f32 %v4859_v58, %v4858_v57  ;;  %v4853_v59 = vadd.f32 %v4852_v26, %v4851_v56 }
0x2958   :  { %v4861_v60 = vrot.slane %v4860_v47, 1  ;;  %v4855_v63 = vmul.f32 0.125, %v4853_v59 }
0x295a   :  { %v4862_v62 = vadd.f32 %v4861_v60, %v4860_v47 }
0x295c   :  { %v4863_v14 = vmul.f32 0.125, %v4862_v62 }
0x295e   :  { %v4865_v61 = vsel %vm4864_vm6, %v4855_v63, %v4863_v14 }
0x295f   :  { %5792 = vmatmul.mubr.msk.f32.vlgmr.msra.gmra.mxu1 %vm260_vm2, %v4865_v61 }
0x2960   :  { %5795 = vmatpush3.msra.mxu1 %v4966_v0  ;;  %5826 = vmatprep.mubr.msk.f32.mxu1 %vm5987_vm3, %v5985_v16 }
0x2961   :  { %5796 = vmatprep.subr.mxu1 %v5985_v16 }
0x2962   :  { %5797 = vmatpush3.msra.mxu1 %v4965_v1 }
0x2963   :  { %5798 = vmatprep.subr.mxu1 %v5985_v16 }
0x2964   :  { %5799 = vmatpush3.msra.mxu1 %v4964_v2 }
0x2965   :  { %5800 = vmatprep.subr.mxu1 %v5985_v16 }
0x2966   :  { %5801 = vmatpush3.msra.mxu1 %v4963_v3 }
0x2967   :  { %5802 = vmatprep.subr.mxu1 %v5985_v16 }
0x2968   :  { %5803 = vmatpush3.msra.mxu1 %v4962_v5 }
0x2969   :  { %5804 = vmatprep.subr.mxu1 %v5985_v16 }
0x296a   :  { %5805 = vmatpush3.msra.mxu1 %v4961_v6 }
0x296b   :  { %5806 = vmatprep.subr.mxu1 %v5985_v16 }
0x296c   :  { %5807 = vmatpush3.msra.mxu1 %v4960_v7 }
0x296d   :  { %5808 = vmatprep.subr.mxu1 %v5985_v16 }
0x296e   :  { %5809 = vmatpush3.msra.mxu1 %v4959_v19 }
0x296f   :  { %5810 = vmatprep.subr.mxu1 %v5985_v16 }
0x2970   :  { %5811 = vmatpush3.msra.mxu1 %v4958_v8 }
0x2971   :  { %5812 = vmatprep.subr.mxu1 %v5985_v16 }
0x2972   :  { %5813 = vmatpush3.msra.mxu1 %v4957_v9 }
0x2973   :  { %5814 = vmatprep.subr.mxu1 %v5985_v16 }
0x2974   :  { %5815 = vmatpush3.msra.mxu1 %v4956_v23 }
0x2975   :  { %5816 = vmatprep.subr.mxu1 %v5985_v16 }
0x2976   :  { %5817 = vmatpush3.msra.mxu1 %v4955_v10 }
0x2977   :  { %5818 = vmatprep.subr.mxu1 %v5985_v16 }
0x2978   :  { %5819 = vmatpush3.msra.mxu1 %v4954_v11 }
0x2979   :  { %5820 = vmatprep.subr.mxu1 %v5985_v16 }
0x297a   :  { %5821 = vmatpush3.msra.mxu1 %v4953_v12 }
0x297b   :  { %5822 = vmatprep.subr.mxu1 %v5985_v16 }
0x297c   :  { %5823 = vmatpush3.msra.mxu1 %v4952_v33 }
0x297d   :  { %5824 = vmatprep.subr.mxu1 %v5985_v16  ;;  %v5279_v16 = vld [vmem:[#allocation2] ss:$0 sm:$0xff] }
0x297e   :  { %5825 = vmatpush3.msra.mxu1 %v4951_v13 }
0x2a1f   :  { %v4946_v27 = vpop.f32.mrf.mxu1 }
0x2a20   :  { %v4947_v37 = vadd.f32 %v5276_v25, %v4946_v27 }
0x2a21   :  { %v5793_v15 = vpop.f32.mrf.mxu1 }
0x2a22   :  { %v4950_v28 = vmax.f32 %v4947_v37, 0.0 }
0x2a24   :  { %5827 = vmatmul.mubr.f32.vlgmr.msra.gmra.mxu1 %v4950_v28 }
0x2ae4   :  { %v5040_v35 = vpop.f32.mrf.mxu1 }
0x2ae5   :  { %v5041_v21 = vadd.f32 %v5278_v34, %v5040_v35 }
0x2ae6   :  { %v5828_v38 = vpop.f32.mrf.mxu1 }
0x2ae7   :  { %v5044_v41 = vmax.f32 %v5041_v21, 0.0 }
0x2ae9   :  { %5846 = vmatmul.mubr.msk.f32.vlgmr.msra.gmra.mxu0 %vm2422_vm5, %v5044_v41 }
0x2ba9   :  { %v5129_v42 = vpop.f32.mrf.mxu0 }
0x2baa   :  { %v5130_v4 = vadd.f32 %v5279_v16, %v5129_v42 }
0x2bab   :  { %v5847_v36 = vpop.f32.mrf.mxu0 }
0x2bac   :  { %v5281_v22 = vmul.f32 -1.442695, %v5130_v4 }
0x2bae   :  { %5976 = vpow2.f32 %v5281_v22 }
0x2bbb   :  { %v5977_v43 = vpop.eup %5976 }
0x2bbc   :  { %v5136_v44 = vadd.f32 1.0, %v5977_v43 }
0x2bbe   :  { %5978 = vrcp.f32 %v5136_v44 }
0x2bcb   :  { %v5979_v46 = vpop.eup %5978 }
0x2bcc   :  { %5140 = vst.msk [vmem:[%s5179_s2] sm:$0x3] %vm5139_vm7, %v5979_v46 }

</bundles_post_ra>
